<compile_context>
chip_gen: v6e
topology: v6e:2x2x1
jax: 0.10.0
libtpu: 0.0.40
codegen_flags: <defaults>
</compile_context>

<pallas_src>
import functools
import math

import jax
import jax.numpy as jnp
from jax.experimental import pallas as pl
from jax.experimental.pallas import tpu as pltpu


# ----------------------------- glue (plain JAX) -----------------------------

def axial_rope_theta(pos, d_head, n_heads):
    """AxialRoPE.forward: pos (..., 2) -> theta (..., n_heads, d_head // 4)."""
    dim = d_head // 2
    log_min = math.log(math.pi)
    log_max = math.log(10.0 * math.pi)
    freqs = jnp.exp(jnp.linspace(log_min, log_max, n_heads * dim // 4 + 1)[:-1])
    freqs = freqs.reshape(dim // 4, n_heads).T          # (n_heads, dim // 4)
    theta_h = pos[..., None, 0:1] * freqs               # (..., n_heads, dim // 4)
    theta_w = pos[..., None, 1:2] * freqs
    return jnp.concatenate([theta_h, theta_w], axis=-1)  # (..., n_heads, d_head // 4)


def natten_bias(H, W, kernel_size):
    """Dense (S, S) additive mask with NATTEN na2d semantics -- reference use only."""
    K = kernel_size
    ii, jj = jnp.meshgrid(jnp.arange(H), jnp.arange(W), indexing="ij")
    qi = ii.reshape(-1)
    qj = jj.reshape(-1)
    start_i = jnp.clip(qi - K // 2, 0, H - K)
    start_j = jnp.clip(qj - K // 2, 0, W - K)
    ki = qi[None, :]
    kj = qj[None, :]
    in_i = (ki >= start_i[:, None]) & (ki < start_i[:, None] + K)
    in_j = (kj >= start_j[:, None]) & (kj < start_j[:, None] + K)
    mask = in_i & in_j
    return jnp.where(mask, 0.0, -1e30).astype(jnp.float32)


def _pick_tile_rows(H, W, kernel_size, target=256):
    """Query-tile height: divides H, tall enough so the 3-tile band covers the K-window,
    and (when possible) gives >= `target` query positions per step for MXU efficiency."""
    need = (kernel_size + 1) // 2
    divisors = [d for d in range(1, H + 1) if H % d == 0]
    ok = [d for d in divisors if d >= need and ((d * W) % 8 == 0 or d == H)]
    if not ok:
        return H
    for d in ok:
        if d * W >= target:
            return d
    return ok[-1]


# ------------------------------- Pallas kernel -------------------------------

def nsa_kernel(xu_ref, xm_ref, xd_ref, ns_ref, wqkv_ref, wout_ref,
               cos_ref, sina_ref, sinb_ref, sscale_ref, qinfo_ref, kinfo_ref,
               o_ref, attn_scr, *, n_heads, d_head, H, W, kernel_size,
               compute_dtype, eps=1e-6):
    f32 = jnp.float32
    TQ, C = xm_ref.shape
    NB = 3 * TQ
    E = d_head
    D4 = E // 4
    K = kernel_size

    # ---- key/value band = [row-tile above | this row-tile | row-tile below] --------
    x_mid = xm_ref[...].astype(f32)                                   # (TQ, C) residual rows
    xb = jnp.concatenate([xu_ref[...].astype(f32), x_mid,
                          xd_ref[...].astype(f32)], axis=0)           # (NB, C)

    # ---- AdaRMSNorm (f32 on the VPU) -------------------------------------------------
    ns = ns_ref[...].astype(f32)                                      # (1, C)
    xn = xb * (ns * jax.lax.rsqrt(jnp.mean(xb * xb, axis=-1, keepdims=True) + eps))

    # ---- qkv projection: bf16 MXU inputs, f32 accumulation ---------------------------
    qkv = jnp.dot(xn.astype(compute_dtype), wqkv_ref[...],
                  preferred_element_type=f32)                         # (NB, 3C)

    # ---- axial RoPE on the flat layout (signs / pass-through 1s baked into tables) ---
    #   y = x*cos + roll(x, -D4)*(-sin on x1 lanes) + roll(x, +D4)*(+sin on x2 lanes)
    roll = pltpu.roll if C % 128 == 0 else jnp.roll   # pltpu.roll = cheap XLU rotate when lane-aligned
    cos_t, sin_a, sin_b = cos_ref[...], sina_ref[...], sinb_ref[...]  # (NB, C) f32

    def rope(t, c, sa, sb):
        return t * c + roll(t, -D4, axis=1) * sa + roll(t, D4, axis=1) * sb

    q_flat = rope(qkv[TQ:2 * TQ, 0:C],
                  cos_t[TQ:2 * TQ], sin_a[TQ:2 * TQ], sin_b[TQ:2 * TQ])   # (TQ, C)
    k_flat = rope(qkv[:, C:2 * C], cos_t, sin_a, sin_b)                   # (NB, C)
    v_flat = qkv[:, 2 * C:3 * C]                                          # (NB, C)

    # ---- one-time shuffle to head-major; all heavy math below is head-batched --------
    qh = jnp.stack([q_flat[:, h * E:(h + 1) * E] for h in range(n_heads)], axis=0)  # (nh, TQ, E)
    kh = jnp.stack([k_flat[:, h * E:(h + 1) * E] for h in range(n_heads)], axis=0)  # (nh, NB, E)
    vh = jnp.stack([v_flat[:, h * E:(h + 1) * E] for h in range(n_heads)], axis=0)  # (nh, NB, E)

    # ---- cosine-sim scaling (scale_for_cosine_sim), f32 ------------------------------
    ss = sscale_ref[...]                                                  # (nh, 1, 1) sqrt(scale)
    qh = qh * (ss * jax.lax.rsqrt(jnp.sum(qh * qh, axis=-1, keepdims=True) + eps))
    kh = kh * (ss * jax.lax.rsqrt(jnp.sum(kh * kh, axis=-1, keepdims=True) + eps))

    # ---- natten na2d neighbourhood mask from O(S) index vectors (no (S,S) bias) ------
    q_row = qinfo_ref[:, 0:1]                                             # (TQ, 1) absolute row
    q_col = qinfo_ref[:, 1:2]                                             # (TQ, 1)
    k_row = kinfo_ref[0:1, :]                                             # (1, NB)
    k_col = kinfo_ref[1:2, :]                                             # (1, NB)
    k_ok = kinfo_ref[2:3, :]                                              # 1 = real key, 0 = clamped dup
    si = jnp.clip(q_row - K // 2, 0, H - K)
    sj = jnp.clip(q_col - K // 2, 0, W - K)
    in_win = ((k_row >= si) & (k_row < si + K) &
              (k_col >= sj) & (k_col < sj + K) & (k_ok > 0))
    bias = jnp.where(in_win, 0.0, -1e30).astype(f32)                      # (TQ, NB)

    # ---- attention: batched over heads, bf16 MXU inputs, f32 softmax -----------------
    s = jnp.einsum('hqe,hke->hqk', qh.astype(compute_dtype), kh.astype(compute_dtype),
                   preferred_element_type=f32)                            # (nh, TQ, NB)
    s = s + bias[None, :, :]
    s = s - jnp.max(s, axis=-1, keepdims=True)
    p = jnp.exp(s)
    a = p * pl.reciprocal(jnp.sum(p, axis=-1, keepdims=True), approx=True)
    o_h = jnp.einsum('hqk,hke->hqe', a.astype(compute_dtype), vh.astype(compute_dtype),
                     preferred_element_type=f32)                          # (nh, TQ, E)

    # ---- merge heads into a lane-dense VMEM slab, output projection, residual --------
    for h in range(n_heads):
        attn_scr[:, h * E:(h + 1) * E] = o_h[h]
    # TODO(synk): dropout omitted (p=0.0 / eval mode -> identity).
    out = jnp.dot(attn_scr[...].astype(compute_dtype), wout_ref[...],
                  preferred_element_type=f32)                             # (TQ, C)
    o_ref[...] = (out + x_mid).astype(o_ref.dtype)


# ------------------------------- wrapper --------------------------------------

def neighborhood_self_attention_block(x, pos, cond, params, kernel_size,
                                      tile_rows=None, compute_dtype=jnp.bfloat16):
    N, H, W, C = x.shape
    nh = params["scale"].shape[0]
    E = C // nh
    D4 = E // 4
    S = H * W
    K = kernel_size
    f32 = jnp.float32

    assert C % nh == 0 and E % 4 == 0
    assert K % 2 == 1 and K <= H and K <= W

    TQR = tile_rows if tile_rows is not None else _pick_tile_rows(H, W, K)
    assert H % TQR == 0 and 2 * TQR >= K, "tile_rows must divide H and cover the K window"
    TQ = TQR * W
    n_qt = H // TQR
    NB = 3 * TQ
    assert TQ % 8 == 0 or n_qt == 1

    # AdaRMSNorm conditioning scale (tiny matmul; kept as glue)
    ns = (cond.astype(f32) @ params["w_norm"].astype(f32).T + 1.0).reshape(N, 1, C)

    # --- RoPE tables in the flat (position, C) layout, signs / pass-through baked in ---
    theta = axial_rope_theta(pos.astype(f32), E, nh).reshape(S, nh, D4)
    rest = jnp.zeros((S, nh, E - 2 * D4), f32)
    cos_f = jnp.concatenate([jnp.cos(theta), jnp.cos(theta), jnp.ones_like(rest)], -1).reshape(S, C)
    sina_f = jnp.concatenate([-jnp.sin(theta), jnp.zeros_like(theta), rest], -1).reshape(S, C)
    sinb_f = jnp.concatenate([jnp.zeros_like(theta), jnp.sin(theta), rest], -1).reshape(S, C)

    # --- per-query-tile key band rows: row tiles [qt-1, qt, qt+1] clamped to the image ---
    tiles = jnp.clip(jnp.arange(n_qt)[:, None] + jnp.array([-1, 0, 1])[None, :], 0, n_qt - 1)
    band_pos = (tiles[:, :, None] * TQ + jnp.arange(TQ)[None, None, :]).reshape(n_qt, NB)
    cos_b, sina_b, sinb_b = cos_f[band_pos], sina_f[band_pos], sinb_f[band_pos]  # (n_qt, NB, C)

    # --- O(S)-sized integer index tables for the in-kernel neighbourhood mask -----------
    lin = jnp.arange(TQ, dtype=jnp.int32)
    q_row = jnp.arange(n_qt, dtype=jnp.int32)[:, None] * TQR + (lin // W)[None, :]   # (n_qt, TQ)
    q_col = jnp.broadcast_to((lin % W)[None, :], (n_qt, TQ))
    q_info = jnp.stack([q_row, q_col], axis=-1).astype(jnp.int32)                    # (n_qt, TQ, 2)

    linb = jnp.arange(NB, dtype=jnp.int32)
    seg = linb // TQ
    qt_idx = jnp.arange(n_qt, dtype=jnp.int32)[:, None]
    k_tile = jnp.clip(qt_idx - 1 + seg[None, :], 0, n_qt - 1)                        # (n_qt, NB)
    k_row = k_tile * TQR + ((linb % TQ) // W)[None, :]
    k_col = jnp.broadcast_to((linb % W)[None, :], (n_qt, NB))
    k_ok = jnp.where(seg[None, :] == 1, True,
                     jnp.where(seg[None, :] == 0, qt_idx > 0, qt_idx < n_qt - 1))
    k_info = jnp.stack([k_row, k_col, k_ok.astype(jnp.int32)], axis=1).astype(jnp.int32)  # (n_qt, 3, NB)

    xf = x.reshape(N, S, C)
    wqkv_t = params["w_qkv"].T.astype(compute_dtype)          # (C, 3C), bf16 in HBM
    wout_t = params["w_out"].T.astype(compute_dtype)          # (C, C)
    sqrt_scale = jnp.sqrt(params["scale"].astype(f32)).reshape(nh, 1, 1)

    kernel = functools.partial(
        nsa_kernel, n_heads=nh, d_head=E, H=H, W=W, kernel_size=K,
        compute_dtype=compute_dtype)

    # advisory cost estimate (qkv proj + scores + AV + out proj per grid step)
    flops = N * n_qt * (2 * NB * C * 3 * C + 4 * nh * TQ * NB * E + 2 * TQ * C * C)
    transcendentals = N * n_qt * (nh * TQ * NB)
    bytes_accessed = N * n_qt * (4 * (NB * C + TQ * C + 3 * NB * C + TQ * 2 + 3 * NB)
                                 + 2 * (3 * C * C + C * C))

    out = pl.pallas_call(
        kernel,
        out_shape=jax.ShapeDtypeStruct((N, S, C), x.dtype),
        grid=(N, n_qt),
        in_specs=[
            pl.BlockSpec((None, TQ, C), lambda b, t: (b, jnp.maximum(t - 1, 0), 0)),        # x row-tile above
            pl.BlockSpec((None, TQ, C), lambda b, t: (b, t, 0)),                             # x row-tile (queries)
            pl.BlockSpec((None, TQ, C), lambda b, t: (b, jnp.minimum(t + 1, n_qt - 1), 0)),  # x row-tile below
            pl.BlockSpec((None, 1, C), lambda b, t: (b, 0, 0)),                              # AdaRMSNorm scale
            pl.BlockSpec((C, 3 * C), lambda b, t: (0, 0)),                                   # W_qkv^T (bf16)
            pl.BlockSpec((C, C), lambda b, t: (0, 0)),                                       # W_out^T (bf16)
            pl.BlockSpec((None, NB, C), lambda b, t: (t, 0, 0)),                             # RoPE cos (band)
            pl.BlockSpec((None, NB, C), lambda b, t: (t, 0, 0)),                             # RoPE -sin (x1 lanes)
            pl.BlockSpec((None, NB, C), lambda b, t: (t, 0, 0)),                             # RoPE +sin (x2 lanes)
            pl.BlockSpec((nh, 1, 1), lambda b, t: (0, 0, 0)),                                # sqrt(scale) per head
            pl.BlockSpec((None, TQ, 2), lambda b, t: (t, 0, 0)),                             # query (row, col)
            pl.BlockSpec((None, 3, NB), lambda b, t: (t, 0, 0)),                             # key (row, col, valid)
        ],
        out_specs=pl.BlockSpec((None, TQ, C), lambda b, t: (b, t, 0)),
        scratch_shapes=[pltpu.VMEM((TQ, C), jnp.float32)],
        compiler_params=pltpu.CompilerParams(
            dimension_semantics=("parallel", "parallel")),
        cost_estimate=pl.CostEstimate(flops=flops, transcendentals=transcendentals,
                                      bytes_accessed=bytes_accessed),
    )(xf, xf, xf, ns, wqkv_t, wout_t, cos_b, sina_b, sinb_b, sqrt_scale, q_info, k_info)

    return out.reshape(N, H, W, C)


# --------------------------- pure-JAX reference --------------------------------

def reference_forward(x, pos, cond, params, kernel_size, matmul_dtype=jnp.float32):
    """Reference forward. matmul_dtype=bfloat16 mirrors the kernel's MXU input casts
    (f32 accumulation everywhere), which is the fair comparison for the bf16 kernel."""
    f32 = jnp.float32
    md = matmul_dtype
    prec = jax.lax.Precision.HIGHEST if md == jnp.float32 else None
    N, H, W, C = x.shape
    nh = params["scale"].shape[0]
    E = C // nh
    D4 = E // 4
    S = H * W
    skip = x

    ns = cond.astype(f32) @ params["w_norm"].astype(f32).T + 1.0
    mean_sq = jnp.mean(x.astype(f32) ** 2, axis=-1, keepdims=True)
    xn = x.astype(f32) * (ns[:, None, None, :] * jax.lax.rsqrt(mean_sq + 1e-6))

    qkv = jnp.einsum("nhwc,dc->nhwd", xn.astype(md), params["w_qkv"].astype(md),
                     precision=prec, preferred_element_type=f32)
    qkv = qkv.reshape(N, H, W, 3, nh, E)
    q, k, v = qkv[..., 0, :, :], qkv[..., 1, :, :], qkv[..., 2, :, :]

    sqrt_scale = jnp.sqrt(params["scale"].astype(f32))[:, None]
    q = q * (sqrt_scale * jax.lax.rsqrt(jnp.sum(q * q, -1, keepdims=True) + 1e-6))
    k = k * (sqrt_scale * jax.lax.rsqrt(jnp.sum(k * k, -1, keepdims=True) + 1e-6))

    theta = axial_rope_theta(pos.astype(f32), E, nh)           # (H, W, nh, D4)
    cos_t, sin_t = jnp.cos(theta), jnp.sin(theta)

    def rope(t):
        t1, t2, rest = t[..., :D4], t[..., D4:2 * D4], t[..., 2 * D4:]
        return jnp.concatenate([t1 * cos_t - t2 * sin_t,
                                t2 * cos_t + t1 * sin_t, rest], axis=-1)

    q, k = rope(q), rope(k)

    qf = q.reshape(N, S, nh, E)
    kf = k.reshape(N, S, nh, E)
    vf = v.reshape(N, S, nh, E)
    bias = natten_bias(H, W, kernel_size)

    s = jnp.einsum("nqhe,nkhe->nhqk", qf.astype(md), kf.astype(md),
                   precision=prec, preferred_element_type=f32) + bias
    a = jax.nn.softmax(s, axis=-1)
    o = jnp.einsum("nhqk,nkhe->nqhe", a.astype(md), vf.astype(md),
                   precision=prec, preferred_element_type=f32).reshape(N, H, W, C)
    out = jnp.einsum("nhwc,dc->nhwd", o.astype(md), params["w_out"].astype(md),
                     precision=prec, preferred_element_type=f32)
    return out + skip


# ----------------------------------- main --------------------------------------

if __name__ == "__main__":
    # Small shapes consistent with the module: d_model=32, d_head=16 -> n_heads=2
    N, H, W = 2, 8, 8
    d_model, d_head, cond_features, kernel_size = 32, 16, 8, 3
    n_heads = d_model // d_head

    key = jax.random.PRNGKey(0)
    k1, k2, k3, k4, k5 = jax.random.split(key, 5)

    # NOTE: the module zero-inits out_proj and the AdaRMSNorm cond linear; small nonzero
    # deterministic values are used so the full datapath is exercised.
    params = {
        "w_qkv": jax.random.normal(k1, (3 * d_model, d_model), jnp.float32) / math.sqrt(d_model),
        "w_out": jax.random.normal(k2, (d_model, d_model), jnp.float32) * 0.02,
        "w_norm": jax.random.normal(k3, (d_model, cond_features), jnp.float32) * 0.02,
        "scale": jnp.full((n_heads,), 10.0, jnp.float32),
    }

    x = jax.random.normal(k4, (N, H, W, d_model), jnp.float32)
    cond = jax.random.normal(k5, (N, cond_features), jnp.float32)
    ys = jnp.linspace(-1.0, 1.0, H)
    xs = jnp.linspace(-1.0, 1.0, W)
    pos = jnp.stack(jnp.meshgrid(ys, xs, indexing="ij"), axis=-1)   # (H, W, 2)

    # tile_rows=2 -> 4 query tiles per image: exercises top / interior / bottom banding.
    out = neighborhood_self_attention_block(x, pos, cond, params, kernel_size, tile_rows=2)
    out = jax.block_until_ready(out)

    ref_bf16 = jax.block_until_ready(
        reference_forward(x, pos, cond, params, kernel_size, matmul_dtype=jnp.bfloat16))
    ref_f32 = jax.block_until_ready(
        reference_forward(x, pos, cond, params, kernel_size, matmul_dtype=jnp.float32))

    err_bf16 = float(jnp.max(jnp.abs(out - ref_bf16)))
    err_f32 = float(jnp.max(jnp.abs(out - ref_f32)))

    assert out.shape == (N, H, W, d_model)
    assert bool(jnp.all(jnp.isfinite(out))), "non-finite output"
    assert err_bf16 < 1e-2, f"mismatch vs bf16-matmul reference: {err_bf16}"
    assert err_f32 < 5e-2, f"mismatch vs f32 reference: {err_f32}"

    print("KERNEL_OK")
</pallas_src>

<mosaic_0001>
module attributes {stable_mosaic.version = 11 : i64} {
  func.func @nsa_kernel(%arg0: i32, %arg1: i32, %arg2: memref<1x16x32xf32, #tpu.memory_space<vmem>>, %arg3: memref<1x16x32xf32, #tpu.memory_space<vmem>>, %arg4: memref<1x16x32xf32, #tpu.memory_space<vmem>>, %arg5: memref<1x1x32xf32, #tpu.memory_space<vmem>>, %arg6: memref<32x96xbf16, #tpu.memory_space<vmem>>, %arg7: memref<32x32xbf16, #tpu.memory_space<vmem>>, %arg8: memref<1x48x32xf32, #tpu.memory_space<vmem>>, %arg9: memref<1x48x32xf32, #tpu.memory_space<vmem>>, %arg10: memref<1x48x32xf32, #tpu.memory_space<vmem>>, %arg11: memref<2x1x1xf32, #tpu.memory_space<vmem>>, %arg12: memref<1x16x2xi32, #tpu.memory_space<vmem>>, %arg13: memref<1x3x48xi32, #tpu.memory_space<vmem>>, %arg14: memref<1x16x32xf32, #tpu.memory_space<vmem>>, %arg15: memref<16x32xf32, #tpu.memory_space<vmem>>) attributes {dimension_semantics = [#tpu.dimension_semantics<parallel>, #tpu.dimension_semantics<parallel>], iteration_bounds = array<i64: 2, 4>, scalar_prefetch = 0 : i64, scratch_operands = 1 : i64, tpu.core_type = #tpu.core_type<tc>, window_params = [{transform_indices = @transform_0, window_bounds = array<i64: 1, 16, 32>}, {transform_indices = @transform_1, window_bounds = array<i64: 1, 16, 32>}, {transform_indices = @transform_2, window_bounds = array<i64: 1, 16, 32>}, {transform_indices = @transform_3, window_bounds = array<i64: 1, 1, 32>}, {pipeline_mode = #tpu.pipeline_mode<synchronous>, transform_indices = @transform_4, window_bounds = array<i64: 32, 96>}, {pipeline_mode = #tpu.pipeline_mode<synchronous>, transform_indices = @transform_5, window_bounds = array<i64: 32, 32>}, {transform_indices = @transform_6, window_bounds = array<i64: 1, 48, 32>}, {transform_indices = @transform_7, window_bounds = array<i64: 1, 48, 32>}, {transform_indices = @transform_8, window_bounds = array<i64: 1, 48, 32>}, {pipeline_mode = #tpu.pipeline_mode<synchronous>, transform_indices = @transform_9, window_bounds = array<i64: 2, 1, 1>}, {transform_indices = @transform_10, window_bounds = array<i64: 1, 16, 2>}, {transform_indices = @transform_11, window_bounds = array<i64: 1, 3, 48>}, {transform_indices = @transform_12, window_bounds = array<i64: 1, 16, 32>}]} {
    %c0 = arith.constant 0 : index
    %c0_0 = arith.constant 0 : index
    %c0_1 = arith.constant 0 : index
    %0 = vector.load %arg3[%c0, %c0_0, %c0_1] : memref<1x16x32xf32, #tpu.memory_space<vmem>>, vector<1x16x32xf32>
    %1 = vector.shape_cast %0 : vector<1x16x32xf32> to vector<16x32xf32>
    %c0_2 = arith.constant 0 : index
    %c0_3 = arith.constant 0 : index
    %c0_4 = arith.constant 0 : index
    %2 = vector.load %arg2[%c0_2, %c0_3, %c0_4] : memref<1x16x32xf32, #tpu.memory_space<vmem>>, vector<1x16x32xf32>
    %3 = vector.shape_cast %2 : vector<1x16x32xf32> to vector<16x32xf32>
    %c0_5 = arith.constant 0 : index
    %c0_6 = arith.constant 0 : index
    %c0_7 = arith.constant 0 : index
    %4 = vector.load %arg4[%c0_5, %c0_6, %c0_7] : memref<1x16x32xf32, #tpu.memory_space<vmem>>, vector<1x16x32xf32>
    %5 = vector.shape_cast %4 : vector<1x16x32xf32> to vector<16x32xf32>
    %6 = tpu.concatenate %3, %1, %5 in 0 : vector<16x32xf32>, vector<16x32xf32>, vector<16x32xf32> -> vector<48x32xf32>
    %c0_8 = arith.constant 0 : index
    %c0_9 = arith.constant 0 : index
    %c0_10 = arith.constant 0 : index
    %7 = vector.load %arg5[%c0_8, %c0_9, %c0_10] : memref<1x1x32xf32, #tpu.memory_space<vmem>>, vector<1x1x32xf32>
    %8 = vector.shape_cast %7 : vector<1x1x32xf32> to vector<1x32xf32>
    %9 = arith.mulf %6, %6 : vector<48x32xf32>
    %cst = arith.constant dense<0.000000e+00> : vector<48xf32>
    %10 = vector.multi_reduction <add>, %9, %cst [1] : vector<48x32xf32> to vector<48xf32>
    %11 = vector.shape_cast %10 : vector<48xf32> to vector<48x1xf32>
    %cst_11 = arith.constant 3.200000e+01 : f32
    %12 = vector.broadcast %cst_11 : f32 to vector<48x1xf32>
    %13 = arith.divf %11, %12 : vector<48x1xf32>
    %cst_12 = arith.constant 9.99999997E-7 : f32
    %14 = vector.broadcast %cst_12 : f32 to vector<48x1xf32>
    %15 = arith.addf %13, %14 : vector<48x1xf32>
    %16 = math.rsqrt %15 : vector<48x1xf32>
    %17 = vector.broadcast %8 : vector<1x32xf32> to vector<48x32xf32>
    %18 = vector.broadcast %16 : vector<48x1xf32> to vector<48x32xf32>
    %19 = arith.mulf %17, %18 : vector<48x32xf32>
    %20 = arith.mulf %6, %19 : vector<48x32xf32>
    %21 = arith.truncf %20 : vector<48x32xf32> to vector<48x32xbf16>
    %c0_13 = arith.constant 0 : index
    %c0_14 = arith.constant 0 : index
    %22 = vector.load %arg6[%c0_13, %c0_14] : memref<32x96xbf16, #tpu.memory_space<vmem>>, vector<32x96xbf16>
    %cst_15 = arith.constant dense<0.000000e+00> : vector<48x96xf32>
    %23 = tpu.matmul %21, %22, %cst_15 {dimension_numbers = #tpu.dot_dimension_numbers<[1], [0], [0], [1], [0, 0, 1, 1], [], []>} : vector<48x32xbf16>, vector<32x96xbf16>, vector<48x96xf32> -> vector<48x96xf32>
    %c0_16 = arith.constant 0 : index
    %c0_17 = arith.constant 0 : index
    %c0_18 = arith.constant 0 : index
    %24 = vector.load %arg8[%c0_16, %c0_17, %c0_18] : memref<1x48x32xf32, #tpu.memory_space<vmem>>, vector<1x48x32xf32>
    %25 = vector.shape_cast %24 : vector<1x48x32xf32> to vector<48x32xf32>
    %c0_19 = arith.constant 0 : index
    %c0_20 = arith.constant 0 : index
    %c0_21 = arith.constant 0 : index
    %26 = vector.load %arg9[%c0_19, %c0_20, %c0_21] : memref<1x48x32xf32, #tpu.memory_space<vmem>>, vector<1x48x32xf32>
    %27 = vector.shape_cast %26 : vector<1x48x32xf32> to vector<48x32xf32>
    %c0_22 = arith.constant 0 : index
    %c0_23 = arith.constant 0 : index
    %c0_24 = arith.constant 0 : index
    %28 = vector.load %arg10[%c0_22, %c0_23, %c0_24] : memref<1x48x32xf32, #tpu.memory_space<vmem>>, vector<1x48x32xf32>
    %29 = vector.shape_cast %28 : vector<1x48x32xf32> to vector<48x32xf32>
    %30 = vector.extract_strided_slice %23 {offsets = [16, 0], sizes = [16, 32], strides = [1, 1]} : vector<48x96xf32> to vector<16x32xf32>
    %31 = vector.extract_strided_slice %25 {offsets = [16, 0], sizes = [16, 32], strides = [1, 1]} : vector<48x32xf32> to vector<16x32xf32>
    %32 = vector.extract_strided_slice %27 {offsets = [16, 0], sizes = [16, 32], strides = [1, 1]} : vector<48x32xf32> to vector<16x32xf32>
    %33 = vector.extract_strided_slice %29 {offsets = [16, 0], sizes = [16, 32], strides = [1, 1]} : vector<48x32xf32> to vector<16x32xf32>
    %34 = arith.mulf %30, %31 : vector<16x32xf32>
    %35 = vector.extract_strided_slice %30 {offsets = [0, 4], sizes = [16, 28], strides = [1, 1]} : vector<16x32xf32> to vector<16x28xf32>
    %36 = vector.extract_strided_slice %30 {offsets = [0, 0], sizes = [16, 4], strides = [1, 1]} : vector<16x32xf32> to vector<16x4xf32>
    %37 = tpu.concatenate %35, %36 in 1 : vector<16x28xf32>, vector<16x4xf32> -> vector<16x32xf32>
    %38 = arith.mulf %37, %32 : vector<16x32xf32>
    %39 = arith.addf %34, %38 : vector<16x32xf32>
    %40 = vector.extract_strided_slice %30 {offsets = [0, 28], sizes = [16, 4], strides = [1, 1]} : vector<16x32xf32> to vector<16x4xf32>
    %41 = vector.extract_strided_slice %30 {offsets = [0, 0], sizes = [16, 28], strides = [1, 1]} : vector<16x32xf32> to vector<16x28xf32>
    %42 = tpu.concatenate %40, %41 in 1 : vector<16x4xf32>, vector<16x28xf32> -> vector<16x32xf32>
    %43 = arith.mulf %42, %33 : vector<16x32xf32>
    %44 = arith.addf %39, %43 : vector<16x32xf32>
    %45 = vector.extract_strided_slice %23 {offsets = [0, 32], sizes = [48, 32], strides = [1, 1]} : vector<48x96xf32> to vector<48x32xf32>
    %46 = arith.mulf %45, %25 : vector<48x32xf32>
    %47 = vector.extract_strided_slice %45 {offsets = [0, 4], sizes = [48, 28], strides = [1, 1]} : vector<48x32xf32> to vector<48x28xf32>
    %48 = vector.extract_strided_slice %45 {offsets = [0, 0], sizes = [48, 4], strides = [1, 1]} : vector<48x32xf32> to vector<48x4xf32>
    %49 = tpu.concatenate %47, %48 in 1 : vector<48x28xf32>, vector<48x4xf32> -> vector<48x32xf32>
    %50 = arith.mulf %49, %27 : vector<48x32xf32>
    %51 = arith.addf %46, %50 : vector<48x32xf32>
    %52 = vector.extract_strided_slice %45 {offsets = [0, 28], sizes = [48, 4], strides = [1, 1]} : vector<48x32xf32> to vector<48x4xf32>
    %53 = vector.extract_strided_slice %45 {offsets = [0, 0], sizes = [48, 28], strides = [1, 1]} : vector<48x32xf32> to vector<48x28xf32>
    %54 = tpu.concatenate %52, %53 in 1 : vector<48x4xf32>, vector<48x28xf32> -> vector<48x32xf32>
    %55 = arith.mulf %54, %29 : vector<48x32xf32>
    %56 = arith.addf %51, %55 : vector<48x32xf32>
    %57 = vector.extract_strided_slice %23 {offsets = [0, 64], sizes = [48, 32], strides = [1, 1]} : vector<48x96xf32> to vector<48x32xf32>
    %58 = vector.extract_strided_slice %44 {offsets = [0, 0], sizes = [16, 16], strides = [1, 1]} : vector<16x32xf32> to vector<16x16xf32>
    %59 = vector.extract_strided_slice %44 {offsets = [0, 16], sizes = [16, 16], strides = [1, 1]} : vector<16x32xf32> to vector<16x16xf32>
    %60 = vector.shape_cast %58 : vector<16x16xf32> to vector<1x16x16xf32>
    %61 = vector.shape_cast %59 : vector<16x16xf32> to vector<1x16x16xf32>
    %62 = tpu.concatenate %60, %61 in 0 : vector<1x16x16xf32>, vector<1x16x16xf32> -> vector<2x16x16xf32>
    %63 = vector.extract_strided_slice %56 {offsets = [0, 0], sizes = [48, 16], strides = [1, 1]} : vector<48x32xf32> to vector<48x16xf32>
    %64 = vector.extract_strided_slice %56 {offsets = [0, 16], sizes = [48, 16], strides = [1, 1]} : vector<48x32xf32> to vector<48x16xf32>
    %65 = vector.shape_cast %63 : vector<48x16xf32> to vector<1x48x16xf32>
    %66 = vector.shape_cast %64 : vector<48x16xf32> to vector<1x48x16xf32>
    %67 = tpu.concatenate %65, %66 in 0 : vector<1x48x16xf32>, vector<1x48x16xf32> -> vector<2x48x16xf32>
    %68 = vector.extract_strided_slice %57 {offsets = [0, 0], sizes = [48, 16], strides = [1, 1]} : vector<48x32xf32> to vector<48x16xf32>
    %69 = vector.extract_strided_slice %57 {offsets = [0, 16], sizes = [48, 16], strides = [1, 1]} : vector<48x32xf32> to vector<48x16xf32>
    %70 = vector.shape_cast %68 : vector<48x16xf32> to vector<1x48x16xf32>
    %71 = vector.shape_cast %69 : vector<48x16xf32> to vector<1x48x16xf32>
    %72 = tpu.concatenate %70, %71 in 0 : vector<1x48x16xf32>, vector<1x48x16xf32> -> vector<2x48x16xf32>
    %c0_25 = arith.constant 0 : index
    %c0_26 = arith.constant 0 : index
    %c0_27 = arith.constant 0 : index
    %73 = vector.load %arg11[%c0_25, %c0_26, %c0_27] : memref<2x1x1xf32, #tpu.memory_space<vmem>>, vector<2x1x1xf32>
    %74 = arith.mulf %62, %62 : vector<2x16x16xf32>
    %cst_28 = arith.constant dense<0.000000e+00> : vector<2x16xf32>
    %75 = vector.multi_reduction <add>, %74, %cst_28 [2] : vector<2x16x16xf32> to vector<2x16xf32>
    %76 = vector.shape_cast %75 : vector<2x16xf32> to vector<2x16x1xf32>
    %cst_29 = arith.constant 9.99999997E-7 : f32
    %77 = vector.broadcast %cst_29 : f32 to vector<2x16x1xf32>
    %78 = arith.addf %76, %77 : vector<2x16x1xf32>
    %79 = math.rsqrt %78 : vector<2x16x1xf32>
    %80 = vector.broadcast %73 : vector<2x1x1xf32> to vector<2x16x1xf32>
    %81 = arith.mulf %80, %79 : vector<2x16x1xf32>
    %82 = vector.broadcast %81 : vector<2x16x1xf32> to vector<2x16x16xf32>
    %83 = arith.mulf %62, %82 : vector<2x16x16xf32>
    %84 = arith.mulf %67, %67 : vector<2x48x16xf32>
    %cst_30 = arith.constant dense<0.000000e+00> : vector<2x48xf32>
    %85 = vector.multi_reduction <add>, %84, %cst_30 [2] : vector<2x48x16xf32> to vector<2x48xf32>
    %86 = vector.shape_cast %85 : vector<2x48xf32> to vector<2x48x1xf32>
    %cst_31 = arith.constant 9.99999997E-7 : f32
    %87 = vector.broadcast %cst_31 : f32 to vector<2x48x1xf32>
    %88 = arith.addf %86, %87 : vector<2x48x1xf32>
    %89 = math.rsqrt %88 : vector<2x48x1xf32>
    %90 = vector.broadcast %73 : vector<2x1x1xf32> to vector<2x48x1xf32>
    %91 = arith.mulf %90, %89 : vector<2x48x1xf32>
    %92 = vector.broadcast %91 : vector<2x48x1xf32> to vector<2x48x16xf32>
    %93 = arith.mulf %67, %92 : vector<2x48x16xf32>
    %c0_32 = arith.constant 0 : index
    %c0_33 = arith.constant 0 : index
    %c0_34 = arith.constant 0 : index
    %94 = vector.load %arg12[%c0_32, %c0_33, %c0_34] : memref<1x16x2xi32, #tpu.memory_space<vmem>>, vector<1x16x1xi32>
    %95 = vector.shape_cast %94 : vector<1x16x1xi32> to vector<16x1xi32>
    %c0_35 = arith.constant 0 : index
    %c0_36 = arith.constant 0 : index
    %c1 = arith.constant 1 : index
    %96 = vector.load %arg12[%c0_35, %c0_36, %c1] : memref<1x16x2xi32, #tpu.memory_space<vmem>>, vector<1x16x1xi32>
    %97 = vector.shape_cast %96 : vector<1x16x1xi32> to vector<16x1xi32>
    %c0_37 = arith.constant 0 : index
    %c0_38 = arith.constant 0 : index
    %c0_39 = arith.constant 0 : index
    %98 = vector.load %arg13[%c0_37, %c0_38, %c0_39] : memref<1x3x48xi32, #tpu.memory_space<vmem>>, vector<1x1x48xi32>
    %99 = vector.shape_cast %98 : vector<1x1x48xi32> to vector<1x48xi32>
    %c0_40 = arith.constant 0 : index
    %c1_41 = arith.constant 1 : index
    %c0_42 = arith.constant 0 : index
    %100 = vector.load %arg13[%c0_40, %c1_41, %c0_42] : memref<1x3x48xi32, #tpu.memory_space<vmem>>, vector<1x1x48xi32>
    %101 = vector.shape_cast %100 : vector<1x1x48xi32> to vector<1x48xi32>
    %c0_43 = arith.constant 0 : index
    %c2 = arith.constant 2 : index
    %c0_44 = arith.constant 0 : index
    %102 = vector.load %arg13[%c0_43, %c2, %c0_44] : memref<1x3x48xi32, #tpu.memory_space<vmem>>, vector<1x1x48xi32>
    %103 = vector.shape_cast %102 : vector<1x1x48xi32> to vector<1x48xi32>
    %c1_i32 = arith.constant 1 : i32
    %104 = vector.broadcast %c1_i32 : i32 to vector<16x1xi32>
    %105 = arith.subi %95, %104 : vector<16x1xi32>
    %c0_i32 = arith.constant 0 : i32
    %c5_i32 = arith.constant 5 : i32
    %106 = vector.broadcast %c0_i32 : i32 to vector<16x1xi32>
    %107 = arith.maxsi %106, %105 : vector<16x1xi32>
    %108 = vector.broadcast %c5_i32 : i32 to vector<16x1xi32>
    %109 = arith.minsi %108, %107 : vector<16x1xi32>
    %c1_i32_45 = arith.constant 1 : i32
    %110 = vector.broadcast %c1_i32_45 : i32 to vector<16x1xi32>
    %111 = arith.subi %97, %110 : vector<16x1xi32>
    %c0_i32_46 = arith.constant 0 : i32
    %c5_i32_47 = arith.constant 5 : i32
    %112 = vector.broadcast %c0_i32_46 : i32 to vector<16x1xi32>
    %113 = arith.maxsi %112, %111 : vector<16x1xi32>
    %114 = vector.broadcast %c5_i32_47 : i32 to vector<16x1xi32>
    %115 = arith.minsi %114, %113 : vector<16x1xi32>
    %116 = vector.broadcast %99 : vector<1x48xi32> to vector<16x48xi32>
    %117 = vector.broadcast %109 : vector<16x1xi32> to vector<16x48xi32>
    %118 = arith.cmpi sge, %116, %117 : vector<16x48xi32>
    %c3_i32 = arith.constant 3 : i32
    %119 = vector.broadcast %c3_i32 : i32 to vector<16x1xi32>
    %120 = arith.addi %109, %119 : vector<16x1xi32>
    %121 = vector.broadcast %99 : vector<1x48xi32> to vector<16x48xi32>
    %122 = vector.broadcast %120 : vector<16x1xi32> to vector<16x48xi32>
    %123 = arith.cmpi slt, %121, %122 : vector<16x48xi32>
    %124 = arith.andi %118, %123 : vector<16x48xi1>
    %125 = vector.broadcast %101 : vector<1x48xi32> to vector<16x48xi32>
    %126 = vector.broadcast %115 : vector<16x1xi32> to vector<16x48xi32>
    %127 = arith.cmpi sge, %125, %126 : vector<16x48xi32>
    %128 = arith.andi %124, %127 : vector<16x48xi1>
    %c3_i32_48 = arith.constant 3 : i32
    %129 = vector.broadcast %c3_i32_48 : i32 to vector<16x1xi32>
    %130 = arith.addi %115, %129 : vector<16x1xi32>
    %131 = vector.broadcast %101 : vector<1x48xi32> to vector<16x48xi32>
    %132 = vector.broadcast %130 : vector<16x1xi32> to vector<16x48xi32>
    %133 = arith.cmpi slt, %131, %132 : vector<16x48xi32>
    %134 = arith.andi %128, %133 : vector<16x48xi1>
    %c0_i32_49 = arith.constant 0 : i32
    %135 = vector.broadcast %c0_i32_49 : i32 to vector<1x48xi32>
    %136 = arith.cmpi sgt, %103, %135 : vector<1x48xi32>
    %137 = vector.broadcast %136 : vector<1x48xi1> to vector<16x48xi1>
    %138 = arith.andi %134, %137 : vector<16x48xi1>
    %cst_50 = arith.constant 0.000000e+00 : f32
    %cst_51 = arith.constant -1.000000e+30 : f32
    %139 = vector.broadcast %cst_50 : f32 to vector<16x48xf32>
    %140 = vector.broadcast %cst_51 : f32 to vector<16x48xf32>
    %141 = arith.select %138, %139, %140 : vector<16x48xi1>, vector<16x48xf32>
    %142 = arith.truncf %83 : vector<2x16x16xf32> to vector<2x16x16xbf16>
    %143 = arith.truncf %93 : vector<2x48x16xf32> to vector<2x48x16xbf16>
    "tpu.trace_start"() <{level = 10 : i32, message = "hqe,hke->hqk"}> : () -> ()
    %cst_52 = arith.constant dense<0.000000e+00> : vector<2x16x48xf32>
    %144 = tpu.matmul %142, %143, %cst_52 {dimension_numbers = #tpu.dot_dimension_numbers<[2], [2], [1], [1], [0, 0, 0, 1, 1, 1], [0], [0]>} : vector<2x16x16xbf16>, vector<2x48x16xbf16>, vector<2x16x48xf32> -> vector<2x16x48xf32>
    "tpu.trace_stop"() : () -> ()
    %145 = vector.shape_cast %141 : vector<16x48xf32> to vector<1x16x48xf32>
    %146 = vector.broadcast %145 : vector<1x16x48xf32> to vector<2x16x48xf32>
    %147 = arith.addf %144, %146 : vector<2x16x48xf32>
    %cst_53 = arith.constant dense<0xFF800000> : vector<2x16xf32>
    %148 = vector.multi_reduction <maximumf>, %147, %cst_53 [2] : vector<2x16x48xf32> to vector<2x16xf32>
    %149 = vector.shape_cast %148 : vector<2x16xf32> to vector<2x16x1xf32>
    %150 = vector.broadcast %149 : vector<2x16x1xf32> to vector<2x16x48xf32>
    %151 = arith.subf %147, %150 : vector<2x16x48xf32>
    %152 = math.exp %151 : vector<2x16x48xf32>
    %cst_54 = arith.constant dense<0.000000e+00> : vector<2x16xf32>
    %153 = vector.multi_reduction <add>, %152, %cst_54 [2] : vector<2x16x48xf32> to vector<2x16xf32>
    %154 = vector.shape_cast %153 : vector<2x16xf32> to vector<2x16x1xf32>
    %155 = tpu.reciprocal %154 {approx = true} : vector<2x16x1xf32> -> vector<2x16x1xf32>
    %156 = vector.broadcast %155 : vector<2x16x1xf32> to vector<2x16x48xf32>
    %157 = arith.mulf %152, %156 : vector<2x16x48xf32>
    %158 = arith.truncf %157 : vector<2x16x48xf32> to vector<2x16x48xbf16>
    %159 = arith.truncf %72 : vector<2x48x16xf32> to vector<2x48x16xbf16>
    "tpu.trace_start"() <{level = 10 : i32, message = "hqk,hke->hqe"}> : () -> ()
    %cst_55 = arith.constant dense<0.000000e+00> : vector<2x16x16xf32>
    %160 = tpu.matmul %158, %159, %cst_55 {dimension_numbers = #tpu.dot_dimension_numbers<[2], [1], [1], [2], [0, 0, 0, 1, 1, 2], [0], [0]>} : vector<2x16x48xbf16>, vector<2x48x16xbf16>, vector<2x16x16xf32> -> vector<2x16x16xf32>
    "tpu.trace_stop"() : () -> ()
    %161 = vector.extract_strided_slice %160 {offsets = [0, 0, 0], sizes = [1, 16, 16], strides = [1, 1, 1]} : vector<2x16x16xf32> to vector<1x16x16xf32>
    %162 = vector.shape_cast %161 : vector<1x16x16xf32> to vector<16x16xf32>
    %c0_56 = arith.constant 0 : index
    %c0_57 = arith.constant 0 : index
    %163 = vector.load %arg15[%c0_56, %c0_57] : memref<16x32xf32, #tpu.memory_space<vmem>>, vector<16x16xf32>
    tpu.vector_store %arg15[%c0_56, %c0_57], %162 {strides = array<i32>} : memref<16x32xf32, #tpu.memory_space<vmem>>, vector<16x16xf32>,
    %164 = vector.extract_strided_slice %160 {offsets = [1, 0, 0], sizes = [1, 16, 16], strides = [1, 1, 1]} : vector<2x16x16xf32> to vector<1x16x16xf32>
    %165 = vector.shape_cast %164 : vector<1x16x16xf32> to vector<16x16xf32>
    %c0_58 = arith.constant 0 : index
    %c16 = arith.constant 16 : index
    %166 = vector.load %arg15[%c0_58, %c16] : memref<16x32xf32, #tpu.memory_space<vmem>>, vector<16x16xf32>
    tpu.vector_store %arg15[%c0_58, %c16], %165 {strides = array<i32>} : memref<16x32xf32, #tpu.memory_space<vmem>>, vector<16x16xf32>,
    %c0_59 = arith.constant 0 : index
    %c0_60 = arith.constant 0 : index
    %167 = vector.load %arg15[%c0_59, %c0_60] : memref<16x32xf32, #tpu.memory_space<vmem>>, vector<16x32xf32>
    %168 = arith.truncf %167 : vector<16x32xf32> to vector<16x32xbf16>
    %c0_61 = arith.constant 0 : index
    %c0_62 = arith.constant 0 : index
    %169 = vector.load %arg7[%c0_61, %c0_62] : memref<32x32xbf16, #tpu.memory_space<vmem>>, vector<32x32xbf16>
    %cst_63 = arith.constant dense<0.000000e+00> : vector<16x32xf32>
    %170 = tpu.matmul %168, %169, %cst_63 {dimension_numbers = #tpu.dot_dimension_numbers<[1], [0], [0], [1], [0, 0, 1, 1], [], []>} : vector<16x32xbf16>, vector<32x32xbf16>, vector<16x32xf32> -> vector<16x32xf32>
    %171 = arith.addf %170, %1 : vector<16x32xf32>
    %c0_64 = arith.constant 0 : index
    %c0_65 = arith.constant 0 : index
    %c0_66 = arith.constant 0 : index
    %172 = vector.load %arg14[%c0_64, %c0_65, %c0_66] : memref<1x16x32xf32, #tpu.memory_space<vmem>>, vector<1x16x32xf32>
    %173 = vector.shape_cast %172 : vector<1x16x32xf32> to vector<16x32xf32>
    %174 = vector.shape_cast %171 : vector<16x32xf32> to vector<1x16x32xf32>
    tpu.vector_store %arg14[%c0_64, %c0_65, %c0_66], %174 {strides = array<i32>} : memref<1x16x32xf32, #tpu.memory_space<vmem>>, vector<1x16x32xf32>,
    return
  }
  func.func @transform_0(%arg0: i32, %arg1: i32) -> (i32, i32, i32) {
    %c1_i32 = arith.constant 1 : i32
    %0 = arith.subi %arg1, %c1_i32 : i32
    %c0_i32 = arith.constant 0 : i32
    %1 = arith.maxsi %0, %c0_i32 : i32
    %c0_i32_0 = arith.constant 0 : i32
    %c0_i32_1 = arith.constant 0 : i32
    return %arg0, %1, %c0_i32_0 : i32, i32, i32
  }
  func.func @transform_1(%arg0: i32, %arg1: i32) -> (i32, i32, i32) {
    %c0_i32 = arith.constant 0 : i32
    %c0_i32_0 = arith.constant 0 : i32
    return %arg0, %arg1, %c0_i32 : i32, i32, i32
  }
  func.func @transform_2(%arg0: i32, %arg1: i32) -> (i32, i32, i32) {
    %c1_i32 = arith.constant 1 : i32
    %0 = arith.addi %arg1, %c1_i32 : i32
    %c3_i32 = arith.constant 3 : i32
    %1 = arith.minsi %0, %c3_i32 : i32
    %c0_i32 = arith.constant 0 : i32
    %c0_i32_0 = arith.constant 0 : i32
    return %arg0, %1, %c0_i32 : i32, i32, i32
  }
  func.func @transform_3(%arg0: i32, %arg1: i32) -> (i32, i32, i32) {
    %c0_i32 = arith.constant 0 : i32
    %c0_i32_0 = arith.constant 0 : i32
    %c0_i32_1 = arith.constant 0 : i32
    return %arg0, %c0_i32, %c0_i32_0 : i32, i32, i32
  }
  func.func @transform_4(%arg0: i32, %arg1: i32) -> (i32, i32) {
    %c0_i32 = arith.constant 0 : i32
    %c0_i32_0 = arith.constant 0 : i32
    %c0_i32_1 = arith.constant 0 : i32
    return %c0_i32, %c0_i32_0 : i32, i32
  }
  func.func @transform_5(%arg0: i32, %arg1: i32) -> (i32, i32) {
    %c0_i32 = arith.constant 0 : i32
    %c0_i32_0 = arith.constant 0 : i32
    %c0_i32_1 = arith.constant 0 : i32
    return %c0_i32, %c0_i32_0 : i32, i32
  }
  func.func @transform_6(%arg0: i32, %arg1: i32) -> (i32, i32, i32) {
    %c0_i32 = arith.constant 0 : i32
    %c0_i32_0 = arith.constant 0 : i32
    %c0_i32_1 = arith.constant 0 : i32
    return %arg1, %c0_i32, %c0_i32_0 : i32, i32, i32
  }
  func.func @transform_7(%arg0: i32, %arg1: i32) -> (i32, i32, i32) {
    %c0_i32 = arith.constant 0 : i32
    %c0_i32_0 = arith.constant 0 : i32
    %c0_i32_1 = arith.constant 0 : i32
    return %arg1, %c0_i32, %c0_i32_0 : i32, i32, i32
  }
  func.func @transform_8(%arg0: i32, %arg1: i32) -> (i32, i32, i32) {
    %c0_i32 = arith.constant 0 : i32
    %c0_i32_0 = arith.constant 0 : i32
    %c0_i32_1 = arith.constant 0 : i32
    return %arg1, %c0_i32, %c0_i32_0 : i32, i32, i32
  }
  func.func @transform_9(%arg0: i32, %arg1: i32) -> (i32, i32, i32) {
    %c0_i32 = arith.constant 0 : i32
    %c0_i32_0 = arith.constant 0 : i32
    %c0_i32_1 = arith.constant 0 : i32
    %c0_i32_2 = arith.constant 0 : i32
    return %c0_i32, %c0_i32_0, %c0_i32_1 : i32, i32, i32
  }
  func.func @transform_10(%arg0: i32, %arg1: i32) -> (i32, i32, i32) {
    %c0_i32 = arith.constant 0 : i32
    %c0_i32_0 = arith.constant 0 : i32
    %c0_i32_1 = arith.constant 0 : i32
    return %arg1, %c0_i32, %c0_i32_0 : i32, i32, i32
  }
  func.func @transform_11(%arg0: i32, %arg1: i32) -> (i32, i32, i32) {
    %c0_i32 = arith.constant 0 : i32
    %c0_i32_0 = arith.constant 0 : i32
    %c0_i32_1 = arith.constant 0 : i32
    return %arg1, %c0_i32, %c0_i32_0 : i32, i32, i32
  }
  func.func @transform_12(%arg0: i32, %arg1: i32) -> (i32, i32, i32) {
    %c0_i32 = arith.constant 0 : i32
    %c0_i32_0 = arith.constant 0 : i32
    return %arg0, %arg1, %c0_i32 : i32, i32, i32
  }
}

</mosaic_0001>

<bundles_post_ra>
// kernel: tpu_custom_call.1
= control target key start
LH: loop header
LB: loop body
LE: loop exit
PB: predicated region body
PF: predicated region fallthrough
CT: control target
= control target key end

     0   :  { %s2435_s21 = smov 0   ;;  %s2437_s22 = smov 0   ;;  %s2996_s0 = inlined_call_operand.vmem [shape: f32[2,64,32], index: 0, kind: input, shape index: {}]   ;;  %s2997_s1 = inlined_call_operand.vmem [shape: f32[2,64,32], index: 1, kind: input, shape index: {}]   ;;  %s2998_s2 = inlined_call_operand.vmem [shape: f32[2,64,32], index: 2, kind: input, shape index: {}]   ;;  %s2999_s3 = inlined_call_operand.vmem [shape: f32[2,1,32], index: 3, kind: input, shape index: {}]   ;;  %s3000_s4 = inlined_call_operand.vmem [shape: bf16[32,96], index: 4, kind: input, shape index: {}]   ;;  %s3001_s5 = inlined_call_operand.vmem [shape: bf16[32,32], index: 5, kind: input, shape index: {}]   ;;  %s3002_s6 = inlined_call_operand.vmem [shape: f32[4,48,32], index: 6, kind: input, shape index: {}]   ;;  %s3003_s7 = inlined_call_operand.vmem [shape: f32[4,48,32], index: 7, kind: input, shape index: {}]   ;;  %s3004_s8 = inlined_call_operand.vmem [shape: f32[4,48,32], index: 8, kind: input, shape index: {}]   ;;  %s3005_s9 = inlined_call_operand.vmem [shape: f32[2,1,1], index: 9, kind: input, shape index: {}]   ;;  %s3006_s10 = inlined_call_operand.vmem [shape: s32[4,16,2], index: 10, kind: input, shape index: {}]   ;;  %s3007_s11 = inlined_call_operand.vmem [shape: s32[4,3,48], index: 11, kind: input, shape index: {}]   ;;  %s3008_s12 = inlined_call_operand.vmem [shape: f32[2,64,32], index: 12, kind: output, shape index: {}]  }
   0x1   :  { %s2439_s23 = smov 0   ;;  %s2441_s24 = smov 0  }
   0x2   :  { %s2443_s25 = smov 0  }
   0x3 LB: > { %3013 = sst [smem:[#allocation3_spill]] %s2348_s24  ;;  %s31_s26 = sadd.s32 1, %s2344_s23  ;;  %s2352_s25 = sphi %s2443_s25, %s22_s25   ;;  %s2348_s24 = sphi %s2441_s24, %s3024_s24   ;;  %s2344_s23 = sphi %s2439_s23, %s3026_s23   ;;  %s2340_s22 = sphi %s2437_s22, %s3022_s22   ;;  %s2336_s21 = sphi %s2435_s21, %s3025_s21  }
   0x4   : > { %s34_s27 = sadd.s32 1, %s2348_s24  ;;  %p32_p0 = scmp.ge.s32.totalorder %s31_s26, 4 }
   0x5   : > { %p2042_p1 = scmp.ge.s32.totalorder %s2352_s25, 1  ;;  %p498_p2 = scmp.lt.s32.totalorder %s2352_s25, 9 }
   0x6   : > { %s3028_s26 = smov (%p32_p0, %s31_s26), 0  ;;  %s3030_s27 = smov (!%p32_p0, %s34_s27), %s2348_s24 }
   0x7   : > { %3014 = sst [smem:[#allocation4_spill]] %s3028_s26  ;;  %p499_p3 = pnand %p2042_p1, %p498_p2 }
   0x8   : > { %p36_p4 = scmp.ge.s32.totalorder %s3030_s27, 2  ;;  %s2043_s28 = sadd.s32 (!%p499_p3), 4294967295, %s2336_s21 }
   0x9   : > { %502 = sbr.rel (%p499_p3) target bundleno = 2428 (0x97c), region = 68  ;;  %p603_p5 = scmp.lt.s32.totalorder (!%p499_p3), %s2340_s22, 1 }
   0xa   : > { %s3032_s27 = smov (%p36_p4, %s3030_s27), 0  ;;  %p600_p6 = scmp.gt.s32.totalorder (!%p499_p3), %s2043_s28, 0 }
   0xb   : > { %3015 = sst [smem:[#allocation5_spill]] %s3032_s27  ;;  %s2047_s29 = sshll.u32 (!%p499_p3), %s2336_s21, 1 }
   0xc   : > { %p618_p7 = scmp.lt.s32.totalorder (!%p499_p3), %s2047_s29, 7  ;;  %s625_s14 = sadd.s32 (!%p499_p3), 1, %s2336_s21 }
   0xd   : > { %p626_p9 = scmp.lt.s32.totalorder (!%p499_p3), %s625_s14, 3  ;;  %p644_p11 = scmp.lt.s32.totalorder (!%p499_p3), %s2336_s21, 3 }
   0xe   : > { %s3034_s22 = smov (!%p603_p5, %s2340_s22), 1  ;;  %s3036_s28 = smov (!%p600_p6, %s2043_s28), 0  ;;  %vm3010_vm0 = vcmask 261120   ;;  %v2248_v18 = vld [vmem:[%s3000_s4 + $0x8] sm:$0xff]   ;;  %v2354_v19 = vmov 0.0   ;;  %v2249_v20 = vld [vmem:[%s3000_s4] sm:$0xff]  }
   0xf   : > { %s2472_s30 = sshll.u32 %s3034_s22, 3  ;;  %s2044_s13 = sshll.u32 %s3036_s28, 1  ;;  %2108 = vmatprep.subr.bf16.mxu0 %v2354_v19  ;;  %2124 = vmatprep.subr.bf16.mxu1 %v2354_v19  ;;  %vm3012_vm1 = vmmov 0   ;;  %vm867_vm2 = vcmask 228352   ;;  %vm886_vm3 = vcmask 31744   ;;  %vm3011_vm4 = vcmask 130048  }
  0x10   : > { %p605_p8 = scmp.lt.s32.totalorder %s2044_s13, 7  ;;  %s3038_s29 = smov (!%p618_p7, %s2047_s29), 7  ;;  %2109 = vmatpush3.bf16.msra.mxu0 %v2248_v18  ;;  %2112 = vmatprep.mubr.msk.bf16.mxu0 %vm3012_vm1, %v2354_v19 }
  0x11   : > { %s621_s15 = sadd.s32 %s2472_s30, %s3038_s29  ;;  %s3042_s14 = smov (!%p626_p9, %s625_s14), 3  ;;  %2110 = vmatprep.subr.bf16.mxu0 %v2354_v19  ;;  %2130 = vmatprep.mubr.msk.bf16.mxu1 %vm3012_vm1, %v2354_v19 }
  0x12   : > { %s3040_s13 = smov (!%p605_p8, %s2044_s13), 7  ;;  %s2477_s17 = sshll.u32 %s621_s15, 3 }
  0x13   : > { %s608_s16 = sadd.s32 %s2472_s30, %s3040_s13  ;;  %s2483_s27 = scalar_lea.vmem %s2997_s1, %s2477_s17 }
  0x14   : > { %s2046_s18 = sshll.u32 %s608_s16, 3  ;;  %v2489_v0 = vld [vmem:[%s2483_s27] sm:$0xff]  ;;  %v2492_v1 = vld [vmem:[%s2483_s27 + $0x8] sm:$0xff]  ;;  %s2050_s24 = sshll.u32 %s3042_s14, 1  ;;  %2111 = vmatpush3.bf16.msra.mxu0 %v2249_v20 }
  0x15   : > { %s610_s28 = scalar_lea.vmem %s2996_s0, %s2046_s18  ;;  %v688_v3 = vmul.f32 %v2489_v0, %v2489_v0  ;;  %v689_v5 = vmul.f32 %v2492_v1, %v2492_v1  ;;  %p631_p10 = scmp.lt.s32.totalorder %s2050_s24, 7  ;;  %2134 = vmatprep.subr.bf16.mxu0 %v2354_v19 }
  0x16   : > { %v2494_v2 = vld [vmem:[%s610_s28] sm:$0xff]  ;;  %v2498_v4 = vld [vmem:[%s610_s28 + $0x8] sm:$0xff]  ;;  %s2359_s13 = smov 68   ;;  %s3046_s21 = smov (!%p644_p11, %s2336_s21), 3 }
  0x17   : > { %v686_v6 = vmul.f32 %v2494_v2, %v2494_v2  ;;  %v687_v7 = vmul.f32 %v2498_v4, %v2498_v4  ;;  %v699_v8 = vsel %vm3010_vm0, %v688_v3, 0.0  ;;  %v702_v10 = vsel %vm3010_vm0, %v689_v5, 0.0  ;;  %s3044_s24 = smov (!%p631_p10, %s2050_s24), 7  ;;  %s2607_s15 = smul.u32 48, %s3046_s21 }
  0x18   : > { %700 = vadd.xlane.f32.xlu1 %v699_v8  ;;  %s634_s26 = sadd.s32 %s2472_s30, %s3044_s24  ;;  %s643_s24 = scalar_lea.vmem %s2999_s3, %s3034_s22 }
  0x19   : > { %v693_v9 = vsel %vm3010_vm0, %v686_v6, 0.0  ;;  %v696_v11 = vsel %vm3010_vm0, %v687_v7, 0.0  ;;  %s2052_s29 = sshll.u32 %s634_s26, 3  ;;  %v2062_v40 = vld [vmem:[%s643_s24] ss:$0 sm:$0xff]  ;;  %s2356_s22 = smov 124  }
  0x1a   : > { %694 = vadd.xlane.f32.xlu0 %v693_v9  ;;  %s636_s16 = scalar_lea.vmem %s2998_s2, %s2052_s29  ;;  %s2357_s26 = smov 92  }
  0x1b   : > { %v2514_v12 = vld [vmem:[%s636_s16 + $0x8] sm:$0xff]  ;;  %v2516_v13 = vld [vmem:[%s636_s16] sm:$0xff]  ;;  %s2358_s29 = smov 100   ;;  %s2617_s14 = scalar_lea.vmem %s3002_s6, %s2607_s15 }
  0x1c   : > { %703 = vadd.xlane.f32.xlu1 %v702_v10  ;;  %v691_v14 = vmul.f32 %v2514_v12, %v2514_v12  ;;  %v690_v15 = vmul.f32 %v2516_v13, %v2516_v13  ;;  %v837_v9 = vld [vmem:[%s2617_s14 + $0x20] sm:$0xff]  ;;  %s2360_s18 = smov 32   ;;  %v2624_v10 = vld [vmem:[%s2617_s14 + $0x10] sm:$0xff]  ;;  %s2644_s28 = scalar_lea.vmem %s3003_s7, %s2607_s15 }
  0x1d   : > { %v2655_v20 = vld [vmem:[%s2644_s28 + $0x18] sm:$0xff]  ;;  %s2364_s16 = smov 4   ;;  %s2083_s20 = sshll.u32 %s3046_s21, 4 }
  0x1e   : > { %697 = vadd.xlane.f32.xlu0 %v696_v11  ;;  %v708_v16 = vsel %vm3010_vm0, %v691_v14, 0.0  ;;  %v705_v17 = vsel %vm3010_vm0, %v690_v15, 0.0  ;;  %v838_v11 = vld [vmem:[%s2617_s14 + $0x28] sm:$0xff]  ;;  %v2647_v14 = vld [vmem:[%s2644_s28 + $0x10] sm:$0xff]  ;;  %s2369_s19 = smov 16   ;;  %s676_s24 = scalar_lea.vmem %s3008_s12, %s2477_s17 }
  0x20   : > { %709 = vadd.xlane.f32.xlu1 %v708_v16 }
  0x22   : > { %706 = vadd.xlane.f32.xlu0 %v705_v17 }
  0xa1   : > { %v701_v21 = vpop.xlane.xlu1 %700 }
  0xa2   : > { %v714_v24 = vmul.f32 0.03125, %v701_v21 }
  0xa3   : > { %v695_v22 = vpop.xlane.xlu0 %694 }
  0xa4   : > { %v712_v23 = vmul.f32 0.03125, %v695_v22  ;;  %v720_v30 = vadd.f32 1e-06, %v714_v24 }
  0xa5   : > { %v704_v26 = vpop.xlane.xlu1 %703 }
  0xa6   : > { %v718_v25 = vadd.f32 1e-06, %v712_v23  ;;  %v715_v28 = vmul.f32 0.03125, %v704_v26 }
  0xa7   : > { %v698_v27 = vpop.xlane.xlu0 %697 }
  0xa8   : > { %2252 = vrsqrt.f32 %v718_v25  ;;  %v713_v29 = vmul.f32 0.03125, %v698_v27  ;;  %v721_v32 = vadd.f32 1e-06, %v715_v28 }
  0xa9   : > { %v710_v33 = vpop.xlane.xlu1 %709 }
  0xaa   : > { %v719_v31 = vadd.f32 1e-06, %v713_v29  ;;  %v717_v35 = vmul.f32 0.03125, %v710_v33  ;;  %v843_v29 = vld [vmem:[%s2644_s28 + $0x20] sm:$0xff] }
  0xab   : > { %v707_v34 = vpop.xlane.xlu0 %706 }
  0xac   : > { %2254 = vrsqrt.f32 %v719_v31  ;;  %v716_v36 = vmul.f32 0.03125, %v707_v34  ;;  %v723_v37 = vadd.f32 1e-06, %v717_v35 }
  0xad   : > { %2256 = vrsqrt.f32 %v720_v30 }
  0xae   : > { %2258 = vrsqrt.f32 %v721_v32  ;;  %v722_v38 = vadd.f32 1e-06, %v716_v36 }
  0xaf   : > { %2260 = vrsqrt.f32 %v723_v37 }
  0xb0   : > { %2262 = vrsqrt.f32 %v722_v38 }
  0xb5   : > { %v2253_v39 = vpop.eup %2252 }
  0xb6   : > { %v736_v41 = vmul.f32 %v2253_v39, %v2062_v40 }
  0xb8   : > { %v742_v46 = vmul.f32 %v736_v41, %v2494_v2  ;;  %v844_v41 = vld [vmem:[%s2644_s28 + $0x28] sm:$0xff] }
  0xb9   : > { %v2255_v42 = vpop.eup %2254 }
  0xba   : > { %v2257_v43 = vpop.eup %2256  ;;  %v737_v44 = vmul.f32 %v2255_v42, %v2062_v40 }
  0xbb   : > { %v2259_v45 = vpop.eup %2258  ;;  %v738_v49 = vmul.f32 %v2257_v43, %v2062_v40 }
  0xbc   : > { %v743_v47 = vmul.f32 %v737_v44, %v2498_v4  ;;  %v739_v50 = vmul.f32 %v2259_v45, %v2062_v40  ;;  %v2261_v51 = vpop.eup %2260 }
  0xbd   : > { %v2263_v52 = vpop.eup %2262  ;;  %v744_v53 = vmul.f32 %v738_v49, %v2489_v0  ;;  %v741_v56 = vmul.f32 %v2261_v51, %v2062_v40  ;;  %v833_v49 = vld [vmem:[%s2617_s14] sm:$0xff] }
  0xbe   : > { %v748_v48 = vpack.c.bf16 %v743_v47, %v742_v46  ;;  %v745_v54 = vmul.f32 %v739_v50, %v2492_v1  ;;  %v740_v55 = vmul.f32 %v2263_v52, %v2062_v40  ;;  %v839_v50 = vld [vmem:[%s2644_s28] sm:$0xff] }
  0xbf   : > { %v747_v59 = vmul.f32 %v741_v56, %v2514_v12  ;;  %v2634_v12 = vld [vmem:[%s2617_s14 + $0x18] sm:$0xff] }
  0xc0   : > { %2113 = vmatmul.mubr.msk.bf16.vlgmr.msra.gmra.mxu0 %vm3010_vm0, %v748_v48  ;;  %v749_v57 = vpack.c.bf16 %v745_v54, %v744_v53  ;;  %v746_v58 = vmul.f32 %v740_v55, %v2516_v13 }
  0xc1   : > { %2116 = vmatprep.mubr.msk.bf16.mxu0 %vm3012_vm1, %v2354_v19 }
  0xc2   : > { %v750_v60 = vpack.c.bf16 %v747_v59, %v746_v58 }
  0xc8   : > { %2117 = vmatmul.mubr.msk.bf16.gmra.mxu0 %vm3010_vm0, %v749_v57 }
  0xc9   : > { %2120 = vmatprep.mubr.msk.bf16.mxu0 %vm3012_vm1, %v2354_v19 }
  0xd0   : > { %2121 = vmatmul.mubr.msk.bf16.gmra.mxu0 %vm3010_vm0, %v750_v60 }
  0xd1   : > { %2140 = vmatprep.mubr.msk.bf16.mxu0 %vm3012_vm1, %v2354_v19 }
 0x180   : > { %v2557_v61 = vpop.f32.mrf.mxu0 }
 0x182   : > { %v2114_v62 = vpop.f32.mrf.mxu0 }
 0x184   : > { %v2559_v63 = vpop.f32.mrf.mxu0 }
 0x186   : > { %v2115_v0 = vpop.f32.mrf.mxu0 }
 0x188   : > { %v2561_v1 = vpop.f32.mrf.mxu0 }
 0x189   : > { %855 = vrot.lane.b32.xlu0 %v2561_v1, %s2356_s22 }
 0x18a   : > { %v2118_v2 = vpop.f32.mrf.mxu0 }
 0x18c   : > { %v2565_v3 = vpop.f32.mrf.mxu0 }
 0x18d   : > { %931 = vrot.lane.b32.xlu0 %v2561_v1, %s2357_s26  ;;  %857 = vrot.lane.b32.xlu1 %v2565_v3, %s2356_s22 }
 0x18e   : > { %v2119_v4 = vpop.f32.mrf.mxu0 }
 0x190   : > { %v2571_v5 = vpop.f32.mrf.mxu0 }
 0x191   : > { %874 = vrot.lane.b32.xlu0 %v2561_v1, %s2358_s29  ;;  %933 = vrot.lane.b32.xlu1 %v2565_v3, %s2357_s26 }
 0x192   : > { %v2122_v6 = vpop.f32.mrf.mxu0 }
 0x194   : > { %v2577_v7 = vpop.f32.mrf.mxu0 }
 0x195   : > { %1003 = vrot.lane.b32.xlu0 %v2561_v1, %s2359_s13  ;;  %876 = vrot.lane.b32.xlu1 %v2565_v3, %s2358_s29 }
 0x196   : > { %v2123_v8 = vpop.f32.mrf.mxu0 }
 0x199   : > { %1005 = vrot.lane.b32.xlu1 %v2565_v3, %s2359_s13  ;;  %935 = vrot.lane.b32.xlu0 %v2571_v5, %s2357_s26 }
 0x19d   : > { %949 = vrot.lane.b32.xlu1 %v2571_v5, %s2356_s22  ;;  %1007 = vrot.lane.b32.xlu0 %v2571_v5, %s2359_s13 }
 0x1a1   : > { %1021 = vrot.lane.b32.xlu0 %v2571_v5, %s2358_s29  ;;  %937 = vrot.lane.b32.xlu1 %v2577_v7, %s2357_s26 }
 0x1a5   : > { %927 = vrot.lane.b32.xlu0 %v2557_v61, %s2357_s26  ;;  %951 = vrot.lane.b32.xlu1 %v2577_v7, %s2356_s22 }
 0x1a9   : > { %945 = vrot.lane.b32.xlu0 %v2557_v61, %s2356_s22  ;;  %1009 = vrot.lane.b32.xlu1 %v2577_v7, %s2359_s13 }
 0x1ad   : > { %999 = vrot.lane.b32.xlu0 %v2557_v61, %s2359_s13  ;;  %1023 = vrot.lane.b32.xlu1 %v2577_v7, %s2358_s29 }
 0x1b1   : > { %1017 = vrot.lane.b32.xlu0 %v2557_v61, %s2358_s29  ;;  %929 = vrot.lane.b32.xlu1 %v2559_v63, %s2357_s26  ;;  %s2672_s26 = scalar_lea.vmem %s3004_s8, %s2607_s15  ;;  %s2363_s15 = smov 96  }
 0x1b2   : > { %v849_v34 = vld [vmem:[%s2672_s26 + $0x20] sm:$0xff]  ;;  %v2678_v39 = vld [vmem:[%s2672_s26 + $0x10] sm:$0xff]  ;;  %v850_v52 = vld [vmem:[%s2672_s26 + $0x28] sm:$0xff] }
 0x1b3   : > { %v2695_v58 = vld [vmem:[%s2672_s26 + $0x18] sm:$0xff]  ;;  %v845_v60 = vld [vmem:[%s2672_s26] sm:$0xff] }
 0x1b5   : > { %907 = vrot.lane.b32.xlu0 %v837_v9, %s2360_s18  ;;  %947 = vrot.lane.b32.xlu1 %v2559_v63, %s2356_s22  ;;  %v834_v9 = vld [vmem:[%s2617_s14 + $0x8] sm:$0xff]  ;;  %s663_s22 = scalar_lea.vmem %s3006_s10, %s2083_s20 }
 0x1b9   : > { %903 = vrot.lane.b32.xlu0 %v2624_v10, %s2360_s18  ;;  %1001 = vrot.lane.b32.xlu1 %v2559_v63, %s2359_s13  ;;  %s2362_s13 = smov 28  }
 0x1bd   : > { %1019 = vrot.lane.b32.xlu1 %v2559_v63, %s2358_s29  ;;  %s2361_s29 = smov 112  }
 0x1c1   : > { %909 = vrot.lane.b32.xlu1 %v838_v11, %s2360_s18  ;;  %v840_v11 = vld [vmem:[%s2644_s28 + $0x8] sm:$0xff] }
 0x1c5   : > { %905 = vrot.lane.b32.xlu1 %v2634_v12, %s2360_s18 }
 0x1fb   : > { %v2638_v13 = vpop.permute.xlu0 %855 }
 0x1ff   : > { %v2649_v15 = vpop.permute.xlu1 %857  ;;  %v932_v16 = vpop.permute.xlu0 %931 }
 0x200   : > { %v959_v17 = vsel %vm867_vm2, %v932_v16, %v2638_v13 }
 0x201   : > { %v965_v18 = vmul.f32 %v959_v17, %v2647_v14 }
 0x203   : > { %v934_v21 = vpop.permute.xlu1 %933  ;;  %979 = vrot.lane.b32.xlu0 %v965_v18, %s2360_s18  ;;  %v2658_v22 = vpop.permute.xlu0 %874 }
 0x204   : > { %v960_v23 = vsel %vm867_vm2, %v934_v21, %v2649_v15  ;;  %v846_v21 = vld [vmem:[%s2672_s26 + $0x8] sm:$0xff]  ;;  %s2058_s26 = sshll.u32 %s3046_s21, 2  ;;  %s2368_s21 = smov 64  }
 0x205   : > { %v966_v24 = vmul.f32 %v960_v23, %v2655_v20 }
 0x207   : > { %v2663_v25 = vpop.permute.xlu1 %876  ;;  %981 = vrot.lane.b32.xlu1 %v966_v24, %s2360_s18  ;;  %v1004_v26 = vpop.permute.xlu0 %1003 }
 0x208   : > { %v1031_v40 = vsel %vm886_vm3, %v1004_v26, %v2658_v22 }
 0x209   : > { %v1037_v45 = vmul.f32 %v1031_v40, %v2678_v39 }
 0x20b   : > { %v1006_v27 = vpop.permute.xlu1 %1005  ;;  %v936_v28 = vpop.permute.xlu0 %935 }
 0x20c   : > { %v1032_v59 = vsel %vm886_vm3, %v1006_v27, %v2663_v25 }
 0x20d   : > { %v1038_v4 = vmul.f32 %v1032_v59, %v2695_v58 }
 0x20f   : > { %v950_v30 = vpop.permute.xlu1 %949  ;;  %v1008_v31 = vpop.permute.xlu0 %1007 }
 0x210   : > { %v961_v32 = vsel %vm867_vm2, %v936_v28, %v950_v30 }
 0x211   : > { %v967_v33 = vmul.f32 %v961_v32, %v843_v29 }
 0x213   : > { %v938_v35 = vpop.permute.xlu1 %937  ;;  %983 = vrot.lane.b32.xlu0 %v967_v33, %s2360_s18  ;;  %v1022_v36 = vpop.permute.xlu0 %1021 }
 0x214   : > { %v1033_v37 = vsel %vm886_vm3, %v1008_v31, %v1022_v36 }
 0x215   : > { %v1039_v38 = vmul.f32 %v1033_v37, %v849_v34 }
 0x217   : > { %v952_v42 = vpop.permute.xlu1 %951  ;;  %1055 = vrot.lane.b32.xlu0 %v1039_v38, %s2360_s18  ;;  %v928_v43 = vpop.permute.xlu0 %927 }
 0x218   : > { %v962_v44 = vsel %vm867_vm2, %v938_v35, %v952_v42 }
 0x219   : > { %v968_v46 = vmul.f32 %v962_v44, %v844_v41 }
 0x21b   : > { %985 = vrot.lane.b32.xlu1 %v968_v46, %s2360_s18  ;;  %v1010_v47 = vpop.permute.xlu1 %1009  ;;  %1051 = vrot.lane.b32.xlu0 %v1037_v45, %s2360_s18  ;;  %v946_v48 = vpop.permute.xlu0 %945 }
 0x21c   : > { %v957_v51 = vsel %vm867_vm2, %v928_v43, %v946_v48 }
 0x21d   : > { %v963_v56 = vmul.f32 %v957_v51, %v839_v50 }
 0x21f   : > { %v1024_v53 = vpop.permute.xlu1 %1023  ;;  %899 = vrot.lane.b32.xlu0 %v833_v49, %s2360_s18  ;;  %v1000_v54 = vpop.permute.xlu0 %999 }
 0x220   : > { %v1034_v55 = vsel %vm886_vm3, %v1010_v47, %v1024_v53 }
 0x221   : > { %v1040_v57 = vmul.f32 %v1034_v55, %v850_v52 }
 0x223   : > { %1057 = vrot.lane.b32.xlu1 %v1040_v57, %s2360_s18  ;;  %v930_v62 = vpop.permute.xlu1 %929  ;;  %975 = vrot.lane.b32.xlu0 %v963_v56, %s2360_s18  ;;  %v1018_v0 = vpop.permute.xlu0 %1017 }
 0x224   : > { %v1029_v2 = vsel %vm886_vm3, %v1000_v54, %v1018_v0 }
 0x225   : > { %v1035_v6 = vmul.f32 %v1029_v2, %v845_v60 }
 0x227   : > { %1053 = vrot.lane.b32.xlu1 %v1038_v4, %s2360_s18  ;;  %v948_v8 = vpop.permute.xlu1 %947  ;;  %1047 = vrot.lane.b32.xlu0 %v1035_v6, %s2360_s18  ;;  %v908_v27 = vpop.permute.xlu0 %907 }
 0x228   : > { %v958_v16 = vsel %vm867_vm2, %v930_v62, %v948_v8  ;;  %v921_v32 = vmul.f32 %v908_v27, %v2571_v5 }
 0x229   : > { %v964_v18 = vmul.f32 %v958_v16, %v840_v11 }
 0x22b   : > { %901 = vrot.lane.b32.xlu1 %v834_v9, %s2360_s18  ;;  %v1002_v17 = vpop.permute.xlu1 %1001  ;;  %v904_v28 = vpop.permute.xlu0 %903 }
 0x22c   : > { %v919_v36 = vmul.f32 %v904_v28, %v2561_v1 }
 0x22f   : > { %977 = vrot.lane.b32.xlu1 %v964_v18, %s2360_s18  ;;  %v1020_v23 = vpop.permute.xlu1 %1019 }
 0x230   : > { %v1030_v24 = vsel %vm886_vm3, %v1002_v17, %v1020_v23 }
 0x231   : > { %v1036_v26 = vmul.f32 %v1030_v24, %v846_v21 }
 0x233   : > { %1049 = vrot.lane.b32.xlu1 %v1036_v26, %s2360_s18  ;;  %v910_v30 = vpop.permute.xlu1 %909 }
 0x234   : > { %v922_v45 = vmul.f32 %v910_v30, %v2577_v7 }
 0x237   : > { %v906_v34 = vpop.permute.xlu1 %905 }
 0x238   : > { %v920_v49 = vmul.f32 %v906_v34, %v2565_v3 }
 0x275   : > { %v980_v29 = vpop.permute.xlu0 %979 }
 0x276   : > { %v995_v38 = vadd.f32 %v980_v29, %v919_v36 }
 0x279   : > { %v982_v40 = vpop.permute.xlu1 %981 }
 0x27a   : > { %v996_v52 = vadd.f32 %v982_v40, %v920_v49 }
 0x285   : > { %v984_v31 = vpop.permute.xlu0 %983 }
 0x286   : > { %v997_v33 = vadd.f32 %v984_v31, %v921_v32 }
 0x289   : > { %v1056_v35 = vpop.permute.xlu0 %1055 }
 0x28a   : > { %v2716_v37 = vadd.f32 %v1056_v35, %v997_v33 }
 0x28c   : > { %1093 = vrot.lane.b32.xlu0 %v2716_v37, %s2361_s29  ;;  %v1192_v24 = vmul.f32 %v2716_v37, %v2716_v37 }
 0x28d   : > { %v1052_v41 = vpop.permute.xlu0 %1051  ;;  %v986_v43 = vpop.permute.xlu1 %985 }
 0x28e   : > { %v2720_v42 = vadd.f32 %v1052_v41, %v995_v38  ;;  %v998_v46 = vadd.f32 %v986_v43, %v922_v45 }
 0x290   : > { %1089 = vrot.lane.b32.xlu0 %v2720_v42, %s2361_s29  ;;  %v1190_v28 = vmul.f32 %v2720_v42, %v2720_v42 }
 0x291   : > { %v900_v44 = vpop.permute.xlu0 %899 }
 0x292   : > { %v917_v50 = vmul.f32 %v900_v44, %v2557_v61 }
 0x295   : > { %v1058_v47 = vpop.permute.xlu1 %1057  ;;  %v976_v48 = vpop.permute.xlu0 %975 }
 0x296   : > { %v2727_v51 = vadd.f32 %v1058_v47, %v998_v46  ;;  %v993_v53 = vadd.f32 %v976_v48, %v917_v50 }
 0x298   : > { %1095 = vrot.lane.b32.xlu1 %v2727_v51, %s2361_s29  ;;  %v1193_v31 = vmul.f32 %v2727_v51, %v2727_v51 }
 0x299   : > { %v1054_v54 = vpop.permute.xlu1 %1053  ;;  %v1048_v55 = vpop.permute.xlu0 %1047 }
 0x29a   : > { %v2731_v56 = vadd.f32 %v1054_v54, %v996_v52  ;;  %v2733_v57 = vadd.f32 %v1048_v55, %v993_v53 }
 0x29c   : > { %1091 = vrot.lane.b32.xlu1 %v2731_v56, %s2361_s29  ;;  %1085 = vrot.lane.b32.xlu0 %v2733_v57, %s2361_s29  ;;  %v1188_v29 = vmul.f32 %v2733_v57, %v2733_v57  ;;  %v1191_v32 = vmul.f32 %v2731_v56, %v2731_v56 }
 0x29d   : > { %v902_v59 = vpop.permute.xlu1 %901 }
 0x29e   : > { %v918_v62 = vmul.f32 %v902_v59, %v2559_v63 }
 0x2a0   : > { %861 = vrot.lane.b32.xlu0 %v2561_v1, %s2362_s13 }
 0x2a1   : > { %v978_v60 = vpop.permute.xlu1 %977 }
 0x2a2   : > { %v994_v0 = vadd.f32 %v978_v60, %v918_v62  ;;  %v851_v60 = vmul.f32 %v2624_v10, %v2561_v1 }
 0x2a5   : > { %v1050_v2 = vpop.permute.xlu1 %1049 }
 0x2a6   : > { %v2741_v4 = vadd.f32 %v1050_v2, %v994_v0 }
 0x2a8   : > { %1087 = vrot.lane.b32.xlu1 %v2741_v4, %s2361_s29  ;;  %v1189_v33 = vmul.f32 %v2741_v4, %v2741_v4 }
 0x2ac   : > { %863 = vrot.lane.b32.xlu1 %v2565_v3, %s2362_s13 }
 0x2fe   : > { %v2746_v6 = vpop.permute.xlu0 %1093 }
 0x2ff   : > { %v1198_v11 = vmul.f32 %v2746_v6, %v2746_v6 }
 0x302   : > { %v2748_v8 = vpop.permute.xlu0 %1089 }
 0x303   : > { %v1196_v9 = vmul.f32 %v2748_v8, %v2748_v8 }
 0x305   : > { %1228 = vrot.lane.b32.xlu0 %v1196_v9, %s2363_s15 }
 0x309   : > { %1232 = vrot.lane.b32.xlu0 %v1198_v11, %s2363_s15 }
 0x30a   : > { %v2756_v16 = vpop.permute.xlu1 %1095 }
 0x30b   : > { %v1199_v30 = vmul.f32 %v2756_v16, %v2756_v16 }
 0x30e   : > { %v2758_v17 = vpop.permute.xlu1 %1091  ;;  %v2760_v18 = vpop.permute.xlu0 %1085 }
 0x30f   : > { %v1197_v21 = vmul.f32 %v2758_v17, %v2758_v17  ;;  %v1194_v23 = vmul.f32 %v2760_v18, %v2760_v18 }
 0x311   : > { %1230 = vrot.lane.b32.xlu1 %v1197_v21, %s2363_s15  ;;  %1224 = vrot.lane.b32.xlu0 %v1194_v23, %s2363_s15 }
 0x312   : > { %v862_v34 = vpop.permute.xlu0 %861 }
 0x313   : > { %v868_v53 = vsel %vm867_vm2, %v2638_v13, %v862_v34 }
 0x314   : > { %v870_v59 = vmul.f32 %v868_v53, %v2647_v14  ;;  %v852_v14 = vmul.f32 %v2634_v12, %v2565_v3 }
 0x315   : > { %880 = vrot.lane.b32.xlu0 %v2561_v1, %s2364_s16 }
 0x316   : > { %v872_v0 = vadd.f32 %v870_v59, %v851_v60 }
 0x319   : > { %1220 = vrot.lane.b32.xlu0 %v1192_v24, %s2363_s15 }
 0x31a   : > { %v2772_v26 = vpop.permute.xlu1 %1087 }
 0x31b   : > { %v1195_v27 = vmul.f32 %v2772_v26, %v2772_v26 }
 0x31d   : > { %1226 = vrot.lane.b32.xlu1 %v1195_v27, %s2363_s15  ;;  %1216 = vrot.lane.b32.xlu0 %v1190_v28, %s2363_s15 }
 0x31e   : > { %v864_v41 = vpop.permute.xlu1 %863 }
 0x31f   : > { %v869_v2 = vsel %vm867_vm2, %v2649_v15, %v864_v41  ;;  %v2365_v15 = vmov 0  }
 0x320   : > { %v871_v11 = vmul.f32 %v869_v2, %v2655_v20  ;;  %2229 = vset.pattern.permute.xlu0 %v2365_v15  ;;  %2230 = vset.pattern.permute.xlu1 %v2365_v15 }
 0x321   : > { %882 = vrot.lane.b32.xlu1 %v2565_v3, %s2364_s16  ;;  %1212 = vrot.lane.b32.xlu0 %v1188_v29, %s2363_s15  ;;  %s667_s16 = scalar_lea.vmem %s3007_s11, %s2058_s26 }
 0x325   : > { %1234 = vrot.lane.b32.xlu1 %v1199_v30, %s2363_s15 }
 0x329   : > { %1222 = vrot.lane.b32.xlu1 %v1193_v31, %s2363_s15 }
 0x32d   : > { %1218 = vrot.lane.b32.xlu1 %v1191_v32, %s2363_s15 }
 0x331   : > { %1214 = vrot.lane.b32.xlu1 %v1189_v33, %s2363_s15 }
 0x377   : > { %v1229_v35 = vpop.permute.xlu0 %1228 }
 0x378   : > { %v1272_v43 = vsel %vm3011_vm4, %v1229_v35, 0.0 }
 0x37b   : > { %v1233_v36 = vpop.permute.xlu0 %1232 }
 0x37c   : > { %v1278_v45 = vsel %vm3011_vm4, %v1233_v36, 0.0 }
 0x383   : > { %v1225_v38 = vpop.permute.xlu0 %1224  ;;  %v1231_v44 = vpop.permute.xlu1 %1230 }
 0x384   : > { %v1266_v40 = vsel %vm3011_vm4, %v1225_v38, 0.0  ;;  %v1275_v49 = vsel %vm3011_vm4, %v1231_v44, 0.0 }
 0x385   : > { %1267 = vadd.xlane.f32.xlu0 %v1266_v40 }
 0x387   : > { %v881_v50 = vpop.permute.xlu0 %880 }
 0x388   : > { %v887_v55 = vsel %vm886_vm3, %v2658_v22, %v881_v50  ;;  %v873_v22 = vadd.f32 %v871_v11, %v852_v14 }
 0x389   : > { %1273 = vadd.xlane.f32.xlu0 %v1272_v43  ;;  %v889_v62 = vmul.f32 %v887_v55, %v2678_v39 }
 0x38b   : > { %v2814_v9 = vadd.f32 %v889_v62, %v872_v0  ;;  %v1221_v20 = vpop.permute.xlu0 %1220 }
 0x38c   : > { %v1260_v21 = vsel %vm3011_vm4, %v1221_v20, 0.0 }
 0x38d   : > { %1279 = vadd.xlane.f32.xlu0 %v1278_v45 }
 0x38f   : > { %v1227_v46 = vpop.permute.xlu1 %1226  ;;  %v1217_v23 = vpop.permute.xlu0 %1216 }
 0x390   : > { %v1269_v47 = vsel %vm3011_vm4, %v1227_v46, 0.0  ;;  %v1254_v12 = vsel %vm3011_vm4, %v1217_v23, 0.0 }
 0x391   : > { %1270 = vadd.xlane.f32.xlu1 %v1269_v47 }
 0x393   : > { %v883_v48 = vpop.permute.xlu1 %882  ;;  %v1213_v27 = vpop.permute.xlu0 %1212 }
 0x394   : > { %v888_v13 = vsel %vm886_vm3, %v2663_v25, %v883_v48  ;;  %v1248_v29 = vsel %vm3011_vm4, %v1213_v27, 0.0 }
 0x395   : > { %1276 = vadd.xlane.f32.xlu1 %v1275_v49  ;;  %v890_v10 = vmul.f32 %v888_v13, %v2695_v58 }
 0x397   : > { %v1235_v52 = vpop.permute.xlu1 %1234  ;;  %v2822_v39 = vadd.f32 %v890_v10, %v873_v22 }
 0x398   : > { %v1281_v54 = vsel %vm3011_vm4, %v1235_v52, 0.0 }
 0x399   : > { %1282 = vadd.xlane.f32.xlu1 %v1281_v54  ;;  %v2847_v54 = vld [vmem:[%s3005_s9 + $0x1] ss:$0 sm:$0xff] }
 0x39b   : > { %v1223_v25 = vpop.permute.xlu1 %1222 }
 0x39c   : > { %v1263_v28 = vsel %vm3011_vm4, %v1223_v25, 0.0 }
 0x39f   : > { %v1219_v58 = vpop.permute.xlu1 %1218 }
 0x3a0   : > { %v1257_v24 = vsel %vm3011_vm4, %v1219_v58, 0.0 }
 0x3a3   : > { %1073 = vrot.lane.b32.xlu0 %v2814_v9, %s2361_s29  ;;  %v1215_v30 = vpop.permute.xlu1 %1214 }
 0x3a4   : > { %v1251_v31 = vsel %vm3011_vm4, %v1215_v30, 0.0 }
 0x3aa   : > { %1075 = vrot.lane.b32.xlu1 %v2822_v39, %s2361_s29 }
 0x3c2   : > { %1261 = vadd.xlane.f32.xlu0 %v1260_v21  ;;  %v1124_v21 = vmul.f32 %v2822_v39, %v2822_v39 }
 0x3c6   : > { %1255 = vadd.xlane.f32.xlu0 %v1254_v12  ;;  %v1131_v12 = vsel %vm3011_vm4, %v1124_v21, 0.0 }
 0x3ca   : > { %1258 = vadd.xlane.f32.xlu0 %v1257_v24 }
 0x3ce   : > { %1264 = vadd.xlane.f32.xlu1 %v1263_v28  ;;  %1249 = vadd.xlane.f32.xlu0 %v1248_v29 }
 0x3d2   : > { %1252 = vadd.xlane.f32.xlu1 %v1251_v31  ;;  %v2861_v31 = vld [vmem:[%s3005_s9] ss:$0 sm:$0xff] }
 0x40e   : > { %v1268_v32 = vpop.xlane.xlu0 %1267 }
 0x40f   : > { %v1290_v50 = vadd.f32 1e-06, %v1268_v32 }
 0x412   : > { %v1274_v33 = vpop.xlane.xlu0 %1273 }
 0x413   : > { %v1292_v45 = vadd.f32 1e-06, %v1274_v33 }
 0x416   : > { %v1280_v34 = vpop.xlane.xlu0 %1279 }
 0x417   : > { %v1294_v41 = vadd.f32 1e-06, %v1280_v34 }
 0x419   : > { %2264 = vrsqrt.f32 %v1294_v41 }
 0x41a   : > { %v1271_v35 = vpop.xlane.xlu1 %1270  ;;  %v2834_v36 = vpop.permute.xlu0 %1073  ;;  %2266 = vrsqrt.f32 %v1292_v45 }
 0x41b   : > { %v1125_v38 = vmul.f32 %v2834_v36, %v2834_v36  ;;  %v1291_v59 = vadd.f32 1e-06, %v1271_v35  ;;  %v1123_v35 = vmul.f32 %v2814_v9, %v2814_v9 }
 0x41d   : > { %v1134_v40 = vsel %vm3011_vm4, %v1125_v38, 0.0  ;;  %v1128_v41 = vsel %vm3011_vm4, %v1123_v35, 0.0 }
 0x41e   : > { %v1277_v43 = vpop.xlane.xlu1 %1276  ;;  %1135 = vadd.xlane.f32.xlu0 %v1134_v40 }
 0x41f   : > { %v1293_v48 = vadd.f32 1e-06, %v1277_v43 }
 0x421   : > { %2268 = vrsqrt.f32 %v1293_v48 }
 0x422   : > { %v1283_v44 = vpop.xlane.xlu1 %1282  ;;  %2270 = vrsqrt.f32 %v1290_v50 }
 0x423   : > { %v1295_v53 = vadd.f32 1e-06, %v1283_v44 }
 0x425   : > { %2272 = vrsqrt.f32 %v1295_v53 }
 0x426   : > { %v2839_v46 = vpop.permute.xlu1 %1075  ;;  %v2265_v52 = vpop.eup %2264  ;;  %2274 = vrsqrt.f32 %v1291_v59 }
 0x427   : > { %v1126_v47 = vmul.f32 %v2839_v46, %v2839_v46  ;;  %v1318_v55 = vmul.f32 %v2265_v52, %v2847_v54  ;;  %v2267_v60 = vpop.eup %2266 }
 0x428   : > { %v1316_v62 = vmul.f32 %v2267_v60, %v2847_v54 }
 0x429   : > { %v1137_v49 = vsel %vm3011_vm4, %v1126_v47, 0.0 }
 0x42a   : > { %1138 = vadd.xlane.f32.xlu1 %v1137_v49 }
 0x42e   : > { %v2269_v0 = vpop.eup %2268 }
 0x42f   : > { %v1317_v2 = vmul.f32 %v2269_v0, %v2847_v54  ;;  %v2271_v13 = vpop.eup %2270 }
 0x430   : > { %v1314_v11 = vmul.f32 %v2271_v13, %v2847_v54 }
 0x432   : > { %v2273_v14 = vpop.eup %2272 }
 0x433   : > { %v1319_v10 = vmul.f32 %v2273_v14, %v2847_v54  ;;  %v2275_v22 = vpop.eup %2274 }
 0x434   : > { %1372 = vperm.xlu0 %2229, %v1318_v55   ;;  %v1315_v20 = vmul.f32 %v2275_v22, %v2847_v54 }
 0x43b   : > { %1362 = vperm.xlu1 %2230, %v1316_v62  }
 0x43f   : > { %1367 = vperm.xlu1 %2230, %v1317_v2  }
 0x443   : > { %1352 = vperm.xlu1 %2230, %v1314_v11  }
 0x447   : > { %1377 = vperm.xlu1 %2230, %v1319_v10  }
 0x44b   : > { %1357 = vperm.xlu1 %2230, %v1315_v20   ;;  %v1262_v25 = vpop.xlane.xlu0 %1261 }
 0x44c   : > { %v1288_v34 = vadd.f32 1e-06, %v1262_v25 }
 0x44f   : > { %v1256_v23 = vpop.xlane.xlu0 %1255 }
 0x450   : > { %v1286_v40 = vadd.f32 1e-06, %v1256_v23 }
 0x453   : > { %1132 = vadd.xlane.f32.xlu0 %v1131_v12  ;;  %v1259_v58 = vpop.xlane.xlu0 %1258 }
 0x454   : > { %v1287_v43 = vadd.f32 1e-06, %v1259_v58 }
 0x457   : > { %v1265_v24 = vpop.xlane.xlu1 %1264  ;;  %v1250_v27 = vpop.xlane.xlu0 %1249 }
 0x458   : > { %v1289_v28 = vadd.f32 1e-06, %v1265_v24  ;;  %v1284_v29 = vadd.f32 1e-06, %v1250_v27 }
 0x45a   : > { %2276 = vrsqrt.f32 %v1289_v28 }
 0x45b   : > { %2278 = vrsqrt.f32 %v1284_v29  ;;  %v1253_v52 = vpop.xlane.xlu1 %1252 }
 0x45c   : > { %2280 = vrsqrt.f32 %v1288_v34  ;;  %v1285_v59 = vadd.f32 1e-06, %v1253_v52 }
 0x45d   : > { %2282 = vrsqrt.f32 %v1286_v40 }
 0x45e   : > { %2284 = vrsqrt.f32 %v1287_v43 }
 0x467   : > { %v2277_v30 = vpop.eup %2276 }
 0x468   : > { %v1313_v32 = vmul.f32 %v2277_v30, %v2861_v31  ;;  %v2279_v33 = vpop.eup %2278 }
 0x469   : > { %v1308_v38 = vmul.f32 %v2279_v33, %v2861_v31  ;;  %v2281_v44 = vpop.eup %2280 }
 0x46a   : > { %1347 = vperm.xlu0 %2229, %v1313_v32   ;;  %v1312_v45 = vmul.f32 %v2281_v44, %v2861_v31  ;;  %v2283_v47 = vpop.eup %2282 }
 0x46b   : > { %v1310_v48 = vmul.f32 %v2283_v47, %v2861_v31  ;;  %v2285_v49 = vpop.eup %2284 }
 0x46c   : > { %v1311_v50 = vmul.f32 %v2285_v49, %v2861_v31 }
 0x46e   : > { %1322 = vperm.xlu0 %2229, %v1308_v38   ;;  %v1392_v38 = vld [vmem:[%s663_s22] sm:$0xff] }
 0x46f   : > { %1129 = vadd.xlane.f32.xlu1 %v1128_v41  ;;  %v2070_v43 = vadd.s32 4294967295, %v1392_v38 }
 0x471   : > { %vm1399_vm5 = vcmp.gt.s32.totalorder %v2070_v43, 0 }
 0x472   : > { %v1400_v52 = vsel %vm1399_vm5, %v2070_v43, 0  ;;  %v2072_v43 = vld [vmem:[%s667_s16] ss:$0 sm:$0xff] }
 0x473   : > { %vm1403_vm6 = vcmp.lt.s32.totalorder %v1400_v52, 5 }
 0x480   : > { %1342 = vperm.xlu1 %2230, %v1312_v45  }
 0x484   : > { %1332 = vperm.xlu1 %2230, %v1310_v48  }
 0x488   : > { %1337 = vperm.xlu1 %2230, %v1311_v50  }
 0x4a7   : > { %v1136_v60 = vpop.xlane.xlu0 %1135 }
 0x4a8   : > { %v1142_v0 = vadd.f32 1e-06, %v1136_v60 }
 0x4af   : > { %v1373_v22 = vpop.permute.xlu0 %1372 }
 0x4b0   : > { %v1390_v21 = vmul.f32 %v1373_v22, %v2746_v6 }
 0x4b3   : > { %v1139_v53 = vpop.xlane.xlu1 %1138 }
 0x4b4   : > { %v1143_v55 = vadd.f32 1e-06, %v1139_v53  ;;  %v1404_v53 = vsel %vm1403_vm6, %v1400_v52, 5 }
 0x4b6   : > { %2286 = vrsqrt.f32 %v1143_v55  ;;  %v1393_v55 = vld [vmem:[%s663_s22 + $0x8] sm:$0xff] }
 0x4b7   : > { %v1363_v62 = vpop.permute.xlu1 %1362  ;;  %2288 = vrsqrt.f32 %v1285_v59  ;;  %v1419_v59 = vadd.s32 3, %v1404_v53 }
 0x4b8   : > { %v1388_v13 = vmul.f32 %v1363_v62, %v2748_v8  ;;  %2290 = vrsqrt.f32 %v1142_v0 }
 0x4bb   : > { %v1368_v2 = vpop.permute.xlu1 %1367 }
 0x4bc   : > { %v1389_v11 = vmul.f32 %v1368_v2, %v2758_v17 }
 0x4be   : > { %v1472_v14 = vpack.c.bf16 %v1389_v11, %v1388_v13 }
 0x4bf   : > { %v1353_v10 = vpop.permute.xlu1 %1352 }
 0x4c0   : > { %1541 = vrot.lane.b32.xlu0 %v1472_v14, %s2363_s15  ;;  %v1386_v6 = vmul.f32 %v1353_v10, %v2760_v18 }
 0x4c3   : > { %v2287_v20 = vpop.eup %2286  ;;  %v1378_v25 = vpop.permute.xlu1 %1377 }
 0x4c4   : > { %v1391_v23 = vmul.f32 %v1378_v25, %v2756_v16  ;;  %v1163_v12 = vmul.f32 %v2287_v20, %v2847_v54  ;;  %v2289_v8 = vpop.eup %2288 }
 0x4c5   : > { %v1309_v17 = vmul.f32 %v2289_v8, %v2861_v31  ;;  %v2291_v24 = vpop.eup %2290 }
 0x4c6   : > { %v1473_v58 = vpack.c.bf16 %v1391_v23, %v1390_v21  ;;  %1181 = vperm.xlu0 %2229, %v1163_v12   ;;  %v1162_v29 = vmul.f32 %v2291_v24, %v2847_v54 }
 0x4c7   : > { %v1358_v27 = vpop.permute.xlu1 %1357 }
 0x4c8   : > { %1543 = vrot.lane.b32.xlu1 %v1473_v58, %s2363_s15  ;;  %v1387_v28 = vmul.f32 %v1358_v27, %v2772_v26 }
 0x4ca   : > { %v1471_v16 = vpack.c.bf16 %v1387_v28, %v1386_v6 }
 0x4cc   : > { %1327 = vperm.xlu1 %2230, %v1309_v17  }
 0x4d0   : > { %1176 = vperm.xlu1 %2230, %v1162_v29  }
 0x4d4   : > { %1539 = vrot.lane.b32.xlu1 %v1471_v16, %s2363_s15 }
 0x4dc   : > { %v1133_v30 = vpop.xlane.xlu0 %1132 }
 0x4dd   : > { %v1141_v32 = vadd.f32 1e-06, %v1133_v30 }
 0x4df   : > { %2292 = vrsqrt.f32 %v1141_v32 }
 0x4e5   : > { %v1348_v35 = vpop.permute.xlu0 %1347 }
 0x4e6   : > { %v1385_v54 = vmul.f32 %v1348_v35, %v2727_v51 }
 0x4e9   : > { %v1323_v13 = vpop.permute.xlu0 %1322 }
 0x4ea   : > { %v1380_v22 = vmul.f32 %v1323_v13, %v2733_v57 }
 0x4ec   : > { %v2293_v48 = vpop.eup %2292 }
 0x4ed   : > { %v1161_v51 = vmul.f32 %v2293_v48, %v2861_v31 }
 0x4f8   : > { %v1130_v33 = vpop.xlane.xlu1 %1129 }
 0x4f9   : > { %v1140_v34 = vadd.f32 1e-06, %v1130_v33 }
 0x4fb   : > { %2294 = vrsqrt.f32 %v1140_v34 }
 0x4fc   : > { %v1343_v26 = vpop.permute.xlu1 %1342 }
 0x4fd   : > { %v1384_v18 = vmul.f32 %v1343_v26, %v2716_v37  ;;  %v1457_v26 = vlaneseq }
 0x4ff   : > { %v1470_v40 = vpack.c.bf16 %v1385_v54, %v1384_v18  ;;  %v1458_v18 = vshrl.u32 %v1457_v26, 7 }
 0x500   : > { %v1333_v41 = vpop.permute.xlu1 %1332 }
 0x501   : > { %1481 = vrot.lane.b32.xlu0 %v1470_v40, %s2363_s15  ;;  %v1382_v45 = vmul.f32 %v1333_v41, %v2720_v42  ;;  %v2071_v42 = vadd.s32 4294967295, %v1393_v55  ;;  %v1459_v40 = vsub.s32 0, %v1458_v18 }
 0x503   : > { %vm1401_vm7 = vcmp.gt.s32.totalorder %v2071_v42, 0 }
 0x504   : > { %v1338_v44 = vpop.permute.xlu1 %1337  ;;  %v1402_v60 = vsel %vm1401_vm7, %v2071_v42, 0 }
 0x505   : > { %v1383_v47 = vmul.f32 %v1338_v44, %v2731_v56  ;;  %v2366_v56 = vmov 1   ;;  %vm1405_vm8 = vcmp.lt.s32.totalorder %v1402_v60, 5 }
 0x506   : > { %v1406_v62 = vsel %vm1405_vm8, %v1402_v60, 5  ;;  %v2238_v60 = vpack.i.bf16 %v2565_v3, %v2561_v1 }
 0x507   : > { %v1469_v49 = vpack.c.bf16 %v1383_v47, %v1382_v45  ;;  %v1420_v0 = vadd.s32 3, %v1406_v62 }
 0x508   : > { %v2295_v50 = vpop.eup %2294 }
 0x509   : > { %1479 = vrot.lane.b32.xlu1 %v1469_v49, %s2363_s15  ;;  %v1160_v37 = vmul.f32 %v2295_v50, %v2861_v31 }
 0x50b   : > { %1166 = vperm.xlu0 %2229, %v1160_v37  }
 0x50d   : > { %1171 = vperm.xlu1 %2230, %v1161_v51  }
 0x511   : > { %1412 = vperm.xlu1 %2230, %v1404_v53  }
 0x515   : > { %1422 = vperm.xlu1 %2230, %v1419_v59  }
 0x519   : > { %2231 = vset.pattern.permute.xlu1 %v2366_v56 }
 0x51a   : > { %1436 = vperm.xlu1 %2231, %v1404_v53  }
 0x51e   : > { %1446 = vperm.xlu1 %2231, %v1419_v59  }
 0x522   : > { %1449 = vperm.xlu1 %2231, %v1420_v0  }
 0x532   : > { %v1542_v11 = vpop.permute.xlu0 %1541 }
 0x533   : > { %v1552_v14 = vsel %vm3011_vm4, %v1542_v11, 0 }
 0x53a   : > { %v1544_v2 = vpop.permute.xlu1 %1543 }
 0x53b   : > { %v1555_v31 = vsel %vm3011_vm4, %v1544_v2, 0 }
 0x53c   : > { %2135 = vmatpush3.bf16.xpose.msra.mxu0 %v1555_v31 }
 0x53d   : > { %2136 = vmatprep.subr.bf16.mxu0 %v2354_v19 }
 0x541   : > { %v1182_v58 = vpop.permute.xlu0 %1181 }
 0x542   : > { %v1187_v17 = vmul.f32 %v1182_v58, %v2839_v46 }
 0x544   : > { %2137 = vmatpush3.bf16.xpose.msra.mxu0 %v1552_v14 }
 0x545   : > { %2138 = vmatprep.subr.bf16.mxu0 %v2354_v19 }
 0x547   : > { %v1328_v10 = vpop.permute.xlu1 %1327 }
 0x548   : > { %v1381_v20 = vmul.f32 %v1328_v10, %v2741_v4 }
 0x54a   : > { %v1468_v25 = vpack.c.bf16 %v1381_v20, %v1380_v22 }
 0x54b   : > { %v1177_v21 = vpop.permute.xlu1 %1176 }
 0x54c   : > { %1477 = vrot.lane.b32.xlu0 %v1468_v25, %s2363_s15  ;;  %v1186_v8 = vmul.f32 %v1177_v21, %v2834_v36 }
 0x54e   : > { %v1467_v57 = vpack.c.bf16 %v1187_v17, %v1186_v8 }
 0x54f   : > { %v1540_v23 = vpop.permute.xlu1 %1539 }
 0x550   : > { %v1549_v12 = vsel %vm3011_vm4, %v1540_v23, 0  ;;  %1415 = vperm.xlu0 %2229, %v1406_v62  }
 0x551   : > { %2139 = vmatpush3.bf16.xpose.msra.mxu0 %v1549_v12 }
 0x552   : > { %2154 = vmatprep.subr.bf16.mxu0 %v2354_v19 }
 0x554   : > { %1425 = vperm.xlu0 %2229, %v1420_v0   ;;  %v2243_v0 = vpack.i.bf16 %v2559_v63, %v2557_v61 }
 0x558   : > { %2232 = vset.pattern.permute.xlu0 %v2366_v56  ;;  %2141 = vmatmul.mubr.msk.bf16.vlgmr.msra.gmra.mxu0 %vm3011_vm4, %v1467_v57 }
 0x559   : > { %1439 = vperm.xlu0 %2232, %v1406_v62   ;;  %2160 = vmatprep.mubr.msk.bf16.mxu0 %vm3012_vm1, %v2354_v19  ;;  %v2233_v62 = vpack.i.bf16 %v2577_v7, %v2571_v5 }
 0x573   : > { %v1482_v4 = vpop.permute.xlu0 %1481 }
 0x574   : > { %v1493_v24 = vsel %vm3011_vm4, %v1482_v4, 0 }
 0x575   : > { %2125 = vmatpush3.bf16.xpose.msra.mxu1 %v1493_v24 }
 0x576   : > { %2126 = vmatprep.subr.bf16.mxu1 %v2354_v19 }
 0x57b   : > { %v1480_v36 = vpop.permute.xlu1 %1479 }
 0x57c   : > { %v1490_v27 = vsel %vm3011_vm4, %v1480_v36, 0 }
 0x57d   : > { %2127 = vmatpush3.bf16.xpose.msra.mxu1 %v1490_v27 }
 0x57e   : > { %2128 = vmatprep.subr.bf16.mxu1 %v2354_v19 }
 0x586   : > { %v1167_v46 = vpop.permute.xlu0 %1166 }
 0x587   : > { %v1184_v30 = vmul.f32 %v1167_v46, %v2814_v9  ;;  %v2073_v9 = vld [vmem:[%s667_s16 + $0x1] ss:$0 sm:$0xff] }
 0x588   : > { %v1172_v28 = vpop.permute.xlu1 %1171 }
 0x589   : > { %v1185_v16 = vmul.f32 %v1172_v28, %v2822_v39  ;;  %v1396_v39 = vld [vmem:[%s667_s16 + $0x2] sm:$0x1] }
 0x58a   : > { %vm1455_vm9 = vcmp.gt.s32.totalorder %v1396_v39, 0 }
 0x58b   : > { %v1466_v32 = vpack.c.bf16 %v1185_v16, %v1184_v30  ;;  %v1456_v41 = vsel %vm1455_vm9, 1, %v2365_v15  ;;  %v2367_v15 = vmov -1e+30  }
 0x58c   : > { %v1413_v33 = vpop.permute.xlu1 %1412  ;;  %v1460_v47 = vrot.slane %v1456_v41, %v1459_v40 }
 0x58d   : > { %vm1417_vm12 = vcmp.ge.s32.totalorder %v2072_v43, %v1413_v33 }
 0x58e   : > { %vm1461_vm8 = vcmp.eq.s32.totalorder %v1460_v47, 1  ;;  %v1647_v47 = vpack.c.bf16 %v2577_v7, %v2571_v5 }
 0x590   : > { %v1423_v34 = vpop.permute.xlu1 %1422 }
 0x591   : > { %vm1427_vm10 = vcmp.lt.s32.totalorder %v2072_v43, %v1423_v34 }
 0x592   : > { %vm1429_vm14 = vmand %vm1417_vm12, %vm1427_vm10  ;;  %vm1598_vm10 = vcmask 392192  }
 0x595   : > { %v1437_v54 = vpop.permute.xlu1 %1436 }
 0x596   : > { %vm1441_vm11 = vcmp.ge.s32.totalorder %v2073_v9, %v1437_v54 }
 0x597   : > { %vm1443_vm2 = vmand %vm1429_vm14, %vm1441_vm11  ;;  %vm1773_vm11 = vcmask 261248  }
 0x599   : > { %v1447_v44 = vpop.permute.xlu1 %1446 }
 0x59a   : > { %vm1451_vm13 = vcmp.lt.s32.totalorder %v2073_v9, %v1447_v44 }
 0x59b   : > { %vm1453_vm5 = vmand %vm1443_vm2, %vm1451_vm13  ;;  %vm3019_vm13 = vcmask 261120  }
 0x59c   : > { %vm1462_vm9 = vmand %vm1453_vm5, %vm1461_vm8 }
 0x59d   : > { %v1450_v48 = vpop.permute.xlu1 %1449  ;;  %v1464_v49 = vsel %vm1462_vm9, 0.0, %v2367_v15  ;;  %vm3020_vm14 = vmmov %vm3019_vm13 }
 0x5be   : > { %v1478_v29 = vpop.permute.xlu0 %1477 }
 0x5bf   : > { %v1487_v6 = vsel %vm3011_vm4, %v1478_v29, 0 }
 0x5c0   : > { %2129 = vmatpush3.bf16.xpose.msra.mxu1 %v1487_v6 }
 0x5c1   : > { %2144 = vmatprep.subr.bf16.mxu1 %v2354_v19 }
 0x5c7   : > { %2131 = vmatmul.mubr.msk.bf16.vlgmr.msra.gmra.mxu1 %vm3011_vm4, %v1466_v32  ;;  %vm1452_vm4 = vcmp.lt.s32.totalorder %v2073_v9, %v1450_v48  ;;  %v1645_v48 = vpack.c.bf16 %v2559_v63, %v2557_v61 }
 0x5c8   : > { %2150 = vmatprep.mubr.msk.bf16.mxu1 %vm3012_vm1, %v2354_v19 }
 0x5cb   : > { %v1416_v35 = vpop.permute.xlu0 %1415 }
 0x5cc   : > { %vm1418_vm6 = vcmp.ge.s32.totalorder %v2072_v43, %v1416_v35 }
 0x5cf   : > { %v1426_v38 = vpop.permute.xlu0 %1425 }
 0x5d0   : > { %vm1428_vm15 = vcmp.lt.s32.totalorder %v2072_v43, %v1426_v38 }
 0x5d1   : > { %vm1430_vm7 = vmand %vm1418_vm6, %vm1428_vm15 }
 0x5d2   : > { %vm3021_vm15 = vmmov %vm3019_vm13 }
 0x5d4   : > { %v1440_v45 = vpop.permute.xlu0 %1439 }
 0x5d5   : > { %vm1442_vm3 = vcmp.ge.s32.totalorder %v2073_v9, %v1440_v45  ;;  %v1646_v45 = vpack.c.bf16 %v2565_v3, %v2561_v1 }
 0x5d6   : > { %vm1444_vm0 = vmand %vm1430_vm7, %vm1442_vm3 }
 0x5d7   : > { %vm1454_vm1 = vmand %vm1444_vm0, %vm1452_vm4  ;;  %vm3016_vm0 = vmmov 0  }
 0x5d8   : > { %vm1463_vm12 = vmand %vm1454_vm1, %vm1461_vm8  ;;  %vm3017_vm1 = vcmask 130048  }
 0x5d9   : > { %v1465_v53 = vsel %vm1463_vm12, 0.0, %v2367_v15  ;;  %vm3018_vm4 = vmmov %vm3017_vm1 }
 0x618   : > { %v1591_v50 = vpop.f32.mrf.mxu0 }
 0x619   : > { %v1592_v52 = vadd.f32 %v1591_v50, %v1464_v49 }
 0x61a   : > { %v2142_v37 = vpop.f32.mrf.mxu0 }
 0x61b   : > { %v1605_v51 = vsel %vm1598_vm10, %v1592_v52, -inf }
 0x61c   : > { %1606 = vmax.xlane.f32.xlu0 %v1605_v51  ;;  %v1594_v55 = vpop.f32.mrf.mxu0 }
 0x61d   : > { %v1595_v59 = vadd.f32 %v1594_v55, %v1465_v53 }
 0x61e   : > { %v2143_v42 = vpop.f32.mrf.mxu0 }
 0x61f   : > { %v1608_v56 = vsel %vm1598_vm10, %v1595_v59, -inf }
 0x620   : > { %1609 = vmax.xlane.f32.xlu1 %v1608_v56 }
 0x631   : > { %2239 = vrot.lane.b32.xlu1 %v2238_v60, %s2361_s29 }
 0x632   : > { %2234 = vrot.lane.b32.xlu0 %v2233_v62, %s2361_s29 }
 0x636   : > { %2244 = vrot.lane.b32.xlu0 %v2243_v0, %s2361_s29 }
 0x687   : > { %v1529_v2 = vpop.f32.mrf.mxu1 }
 0x688   : > { %v1530_v31 = vadd.f32 %v1529_v2, %v1464_v49  ;;  %v2250_v2 = vld [vmem:[%s3001_s5 + $0x8] sm:$0xff]  }
 0x689   : > { %v2132_v13 = vpop.f32.mrf.mxu1 }
 0x68a   : > { %v1599_v11 = vsel %vm1598_vm10, %v1530_v31, -inf }
 0x68b   : > { %v1532_v14 = vpop.f32.mrf.mxu1  ;;  %1600 = vmax.xlane.f32.xlu1 %v1599_v11 }
 0x68c   : > { %v1533_v10 = vadd.f32 %v1532_v14, %v1465_v53 }
 0x68d   : > { %v2133_v22 = vpop.f32.mrf.mxu1 }
 0x68e   : > { %v1602_v20 = vsel %vm1598_vm10, %v1533_v10, -inf }
 0x68f   : > { %1603 = vmax.xlane.f32.xlu0 %v1602_v20 }
 0x6a5   : > { %v1607_v25 = vpop.xlane.xlu0 %1606 }
 0x6a6   : > { %v1613_v21 = vsub.f32 %v1592_v52, %v1607_v25 }
 0x6a8   : > { %v1619_v23 = vmul.f32 1.442695, %v1613_v21 }
 0x6a9   : > { %v1610_v12 = vpop.xlane.xlu1 %1609  ;;  %v2235_v46 = vpop.permute.xlu0 %2234 }
 0x6aa   : > { %2296 = vpow2.f32 %v1619_v23  ;;  %v1614_v36 = vsub.f32 %v1595_v59, %v1610_v12  ;;  %v2237_v28 = vunpack.i.h.bf16 %v2235_v46  ;;  %v2236_v29 = vunpack.i.l.bf16 %v2235_v46 }
 0x6ac   : > { %v1621_v27 = vmul.f32 1.442695, %v1614_v36  ;;  %v1650_v6 = vpack.c.bf16 %v2237_v28, %v2236_v29 }
 0x6ad   : > { %v2240_v58 = vpop.permute.xlu1 %2239  ;;  %v2245_v32 = vpop.permute.xlu0 %2244 }
 0x6ae   : > { %v2242_v8 = vunpack.i.h.bf16 %v2240_v58  ;;  %v2241_v17 = vunpack.i.l.bf16 %v2240_v58  ;;  %2298 = vpow2.f32 %v1621_v27  ;;  %v2247_v33 = vunpack.i.h.bf16 %v2245_v32  ;;  %v2313_v27 = vld [vmem:[%s2483_s27 + $0x8] sm:$0xff] }
 0x6af   : > { %v2246_v34 = vunpack.i.l.bf16 %v2245_v32 }
 0x6b0   : > { %v1649_v57 = vpack.c.bf16 %v2242_v8, %v2241_v17 }
 0x6b1   : > { %v1648_v35 = vpack.c.bf16 %v2247_v33, %v2246_v34 }
 0x6b2   : > { %1712 = vrot.lane.b32.xlu1 %v1649_v57, %s2368_s21  ;;  %v2312_v57 = vld [vmem:[%s2483_s27] sm:$0xff] }
 0x6b7   : > { %v2297_v4 = vpop.eup %2296 }
 0x6b8   : > { %v1629_v24 = vsel %vm1598_vm10, %v2297_v4, 0.0 }
 0x6b9   : > { %1630 = vadd.xlane.f32.xlu0 %v1629_v24 }
 0x6bb   : > { %v2299_v16 = vpop.eup %2298 }
 0x6bc   : > { %v1632_v30 = vsel %vm1598_vm10, %v2299_v16, 0.0 }
 0x6cf   : > { %1714 = vrot.lane.b32.xlu0 %v1650_v6, %s2368_s21 }
 0x6d6   : > { %1633 = vadd.xlane.f32.xlu1 %v1632_v30 }
 0x6e7   : > { %1710 = vrot.lane.b32.xlu1 %v1648_v35, %s2368_s21 }
 0x714   : > { %v1601_v26 = vpop.xlane.xlu1 %1600 }
 0x715   : > { %v1611_v39 = vsub.f32 %v1530_v31, %v1601_v26  ;;  %v2251_v31 = vld [vmem:[%s3001_s5] sm:$0xff]  }
 0x717   : > { %v1615_v54 = vmul.f32 1.442695, %v1611_v39 }
 0x718   : > { %v1604_v18 = vpop.xlane.xlu0 %1603 }
 0x719   : > { %2300 = vpow2.f32 %v1615_v54  ;;  %v1612_v38 = vsub.f32 %v1533_v10, %v1604_v18 }
 0x71b   : > { %v1617_v9 = vmul.f32 1.442695, %v1612_v38 }
 0x71d   : > { %2302 = vpow2.f32 %v1617_v9 }
 0x724   : > { %v1713_v50 = vpop.permute.xlu1 %1712 }
 0x726   : > { %v2301_v40 = vpop.eup %2300 }
 0x727   : > { %v1623_v41 = vsel %vm1598_vm10, %v2301_v40, 0.0 }
 0x728   : > { %1624 = vadd.xlane.f32.xlu0 %v1623_v41 }
 0x72a   : > { %v2303_v43 = vpop.eup %2302 }
 0x72b   : > { %v1626_v44 = vsel %vm1598_vm10, %v2303_v43, 0.0 }
 0x72c   : > { %1627 = vadd.xlane.f32.xlu1 %v1626_v44 }
 0x73d   : > { %1656 = vrot.lane.b32.xlu1 %v1646_v45, %s2368_s21 }
 0x73e   : > { %1658 = vrot.lane.b32.xlu0 %v1647_v47, %s2368_s21 }
 0x742   : > { %v1631_v15 = vpop.xlane.xlu0 %1630  ;;  %1654 = vrot.lane.b32.xlu0 %v1645_v48, %s2368_s21 }
 0x743   : > { %2304 = vrcp.f32 %v1631_v15 }
 0x746   : > { %v1715_v49 = vpop.permute.xlu0 %1714 }
 0x747   : > { %2155 = vmatpush3.bf16.msra.mxu0 %v1715_v49 }
 0x748   : > { %2156 = vmatprep.subr.bf16.mxu0 %v2354_v19 }
 0x74b   : > { %2157 = vmatpush3.bf16.msra.mxu0 %v1713_v50 }
 0x74c   : > { %2158 = vmatprep.subr.bf16.mxu0 %v2354_v19 }
 0x750   : > { %v2305_v5 = vpop.eup %2304 }
 0x751   : > { %v1641_v52 = vmul.f32 %v2305_v5, %v2297_v4 }
 0x75f   : > { %v1634_v1 = vpop.xlane.xlu1 %1633 }
 0x760   : > { %2306 = vrcp.f32 %v1634_v1 }
 0x763   : > { %v1711_v3 = vpop.permute.xlu1 %1710 }
 0x764   : > { %2159 = vmatpush3.bf16.msra.mxu0 %v1711_v3 }
 0x76d   : > { %v2307_v7 = vpop.eup %2306 }
 0x76e   : > { %v1642_v61 = vmul.f32 %v2307_v7, %v2299_v16 }
 0x770   : > { %v1644_v63 = vpack.c.bf16 %v1642_v61, %v1641_v52 }
 0x772   : > { %2161 = vmatmul.mubr.msk.bf16.vlgmr.msra.gmra.mxu0 %vm1598_vm10, %v1644_v63 }
 0x7b1   : > { %v1625_v37 = vpop.xlane.xlu0 %1624 }
 0x7b2   : > { %2308 = vrcp.f32 %v1625_v37 }
 0x7b5   : > { %v1628_v51 = vpop.xlane.xlu1 %1627  ;;  %v1659_v53 = vpop.permute.xlu0 %1658 }
 0x7b6   : > { %2310 = vrcp.f32 %v1628_v51  ;;  %2145 = vmatpush3.bf16.msra.mxu1 %v1659_v53 }
 0x7b7   : > { %2146 = vmatprep.subr.bf16.mxu1 %v2354_v19 }
 0x7b9   : > { %v1657_v55 = vpop.permute.xlu1 %1656  ;;  %v1655_v59 = vpop.permute.xlu0 %1654 }
 0x7ba   : > { %2147 = vmatpush3.bf16.msra.mxu1 %v1657_v55 }
 0x7bb   : > { %2148 = vmatprep.subr.bf16.mxu1 %v2354_v19 }
 0x7be   : > { %2149 = vmatpush3.bf16.msra.mxu1 %v1655_v59 }
 0x7bf   : > { %2164 = vmatprep.subr.bf16.mxu1 %v2354_v19  ;;  %v2309_v42 = vpop.eup %2308 }
 0x7c0   : > { %v1639_v60 = vmul.f32 %v2309_v42, %v2301_v40 }
 0x7c3   : > { %v2311_v56 = vpop.eup %2310 }
 0x7c4   : > { %v1640_v62 = vmul.f32 %v2311_v56, %v2303_v43 }
 0x7c6   : > { %v1643_v0 = vpack.c.bf16 %v1640_v62, %v1639_v60 }
 0x7c8   : > { %2151 = vmatmul.mubr.msk.bf16.vlgmr.msra.gmra.mxu1 %vm1598_vm10, %v1643_v0 }
 0x7c9   : > { %2168 = vmatprep.mubr.msk.bf16.mxu1 %vm3016_vm0, %v2354_v19  ;;  %2165 = vmatpush3.bf16.msra.mxu1 %v2250_v2 }
 0x7ca   : > { %2166 = vmatprep.subr.bf16.mxu1 %v2354_v19 }
 0x7cd   : > { %2167 = vmatpush3.bf16.msra.mxu1 %v2251_v31 }
 0x832   : > { %v1756_v13 = vpop.f32.mrf.mxu0 }
 0x833   : > { %1767 = vrot.lane.b32.xlu1 %v1756_v13, %s2369_s19 }
 0x834   : > { %v2162_v11 = vpop.f32.mrf.mxu0 }
 0x836   : > { %v1759_v14 = vpop.f32.mrf.mxu0 }
 0x837   : > { %1769 = vrot.lane.b32.xlu0 %v1759_v14, %s2369_s19 }
 0x838   : > { %v2163_v10 = vpop.f32.mrf.mxu0 }
 0x888   : > { %v1700_v22 = vpop.f32.mrf.mxu1 }
 0x889   : > { %1763 = vst.msk [vmem:[#allocation2] sm:$0xff] %vm3017_vm1, %v1700_v22 }
 0x88a   : > { %v2152_v20 = vpop.f32.mrf.mxu1 }
 0x88c   : > { %v1703_v25 = vpop.f32.mrf.mxu1 }
 0x88d   : > { %1764 = vst.msk [vmem:[#allocation2 + $0x8] sm:$0xff] %vm3018_vm4, %v1703_v25 }
 0x88e   : > { %v2153_v21 = vpop.f32.mrf.mxu1 }
 0x8a5   : > { %v1768_v19 = vpop.permute.xlu1 %1767 }
 0x8a6   : > { %1774 = vst.msk [vmem:[#allocation2] sm:$0xff] %vm1773_vm11, %v1768_v19 }
 0x8a9   : > { %v1770_v23 = vpop.permute.xlu0 %1769 }
 0x8aa   : > { %1775 = vst.msk [vmem:[#allocation2 + $0x8] sm:$0xff] %vm1773_vm11, %v1770_v23 }
 0x8ad   : > { %v1776_v12 = vld [vmem:[#allocation2] sm:$0xff] }
 0x8b1   : > { %v1777_v58 = vld [vmem:[#allocation2 + $0x8] sm:$0xff] }
 0x8b2   : > { %v1778_v8 = vpack.c.bf16 %v1777_v58, %v1776_v12 }
 0x8b4   : > { %2169 = vmatmul.mubr.msk.bf16.vlgmr.msra.gmra.mxu1 %vm3019_vm13, %v1778_v8 }
 0x974   : > { %v1832_v17 = vpop.f32.mrf.mxu1 }
 0x975   : > { %v1833_v4 = vadd.f32 %v2312_v57, %v1832_v17 }
 0x976   : > { %v2170_v24 = vpop.f32.mrf.mxu1 }
 0x977   : > { %1839 = vst.msk [vmem:[%s676_s24] sm:$0xff] %vm3020_vm14, %v1833_v4 }
 0x978   : > { %v1835_v36 = vpop.f32.mrf.mxu1 }
 0x979   : > { %v1836_v46 = vadd.f32 %v2313_v27, %v1835_v36 }
 0x97a   : > { %v2171_v28 = vpop.f32.mrf.mxu1 }
 0x97b   : > { %1840 = vst.msk [vmem:[%s676_s24 + $0x8] sm:$0xff] %vm3021_vm15, %v1836_v46 }
 0x97c PF: > { %s22_s25 = sadd.s32 1, %s2352_s25   ;;  %s3022_s22 = sld [smem:[#allocation3_spill]] }
 0x97d   : > { %p19_p12 = scmp.ge.s32.totalorder %s22_s25, 10   ;;  %s3023_s26 = sld [smem:[#allocation4_spill]] }
 0x97e   : > { %s3024_s24 = sld [smem:[#allocation5_spill]]  ;;  %s3025_s21 = smov %s2344_s23 }
 0x97f   :  { %21 = sbr.rel (!%p19_p12) target bundleno = 3 (0x3), region = 122 }
 0x983   : > { %s3026_s23 = smov %s3023_s26 }

</bundles_post_ra>
